<compile_context>
chip_gen: v7x
topology: tpu7x:2x2x1
jax: 0.10.0
libtpu: 0.0.40
codegen_flags: <defaults>
</compile_context>

<pallas_src>
import functools

import jax
import jax.numpy as jnp
from jax.experimental import pallas as pl
from jax.experimental.pallas import tpu as pltpu

WEIGHT_ANGLE = 10.0
EPS_DICE = 1e-05

_MAX_TILE_H = 4096           # sanity cap; roofline saturates far below this
_WORK_PLANES_F32 = 18        # estimate of live f32 temporaries per element


def _east_loss_kernel(gt_score_ref, pred_score_ref, ignored_ref,
                      gt_geo_ref, pred_geo_ref, part_ref,
                      *, h_total, tile_h, need_mask, fold_rows, fold_lanes):
    h = pl.program_id(1)

    # Loads in native dtype, cast to f32 in-kernel (free VPU work under DMA).
    gt = gt_score_ref[...].astype(jnp.float32)        # (b_blk, tile_h, W)
    pred = pred_score_ref[...].astype(jnp.float32)
    ign = ignored_ref[...].astype(jnp.float32)
    pm = pred * (1.0 - ign)                            # masked pred for dice

    gg = gt_geo_ref[...].astype(jnp.float32)           # (b_blk, 5, tile_h, W)
    pg = pred_geo_ref[...].astype(jnp.float32)
    d1_gt, d2_gt, d3_gt, d4_gt, angle_gt = (gg[:, c] for c in range(5))
    d1_p, d2_p, d3_p, d4_p, angle_p = (pg[:, c] for c in range(5))

    area_gt = (d1_gt + d2_gt) * (d3_gt + d4_gt)
    area_pred = (d1_p + d2_p) * (d3_p + d4_p)
    w_union = jnp.minimum(d3_gt, d3_p) + jnp.minimum(d4_gt, d4_p)
    h_union = jnp.minimum(d1_gt, d1_p) + jnp.minimum(d2_gt, d2_p)
    area_intersect = w_union * h_union
    area_union = area_gt + area_pred - area_intersect
    iou_map = -jnp.log((area_intersect + 1.0) / (area_union + 1.0))
    angle_map = 1.0 - jnp.cos(angle_p - angle_gt)

    if need_mask:
        # Ragged last row-tile: true select (not a multiply) so NaN/Inf from
        # garbage out-of-bounds rows cannot propagate into the sums.
        row = h * tile_h + jax.lax.broadcasted_iota(jnp.int32, gt.shape, 1)
        valid = row < h_total
        zero = jnp.zeros_like(gt)
        gt = jnp.where(valid, gt, zero)
        pm = jnp.where(valid, pm, zero)
        iou_map = jnp.where(valid, iou_map, zero)
        angle_map = jnp.where(valid, angle_map, zero)

    def _fold(x):
        # (b_blk, tile_h, W) f32 -> (acc_r, acc_c) partial sum, VPU adds only.
        x = jnp.sum(x, axis=0)                         # batch fold (major dim)
        if fold_rows:
            # sublane-tile aligned split: (tile_h//8, 8, W) -> sum over blocks
            x = jnp.sum(x.reshape(tile_h // 8, 8, x.shape[-1]), axis=0)
        if fold_lanes:
            # lane fold via static 128-wide slices (no minor-dim reshape)
            w = x.shape[-1]
            acc = x[:, 0:128]
            for j in range(1, w // 128):
                acc = acc + x[:, j * 128:(j + 1) * 128]
            x = acc
        return x

    p_inter = _fold(gt * pm)          # dice intersection
    p_gt = _fold(gt)                  # sum(gt_score)
    p_pred = _fold(pm)                # sum(masked pred_score)
    p_angle = _fold(angle_map * gt)   # angle-weighted sum
    p_iou = _fold(iou_map * gt)       # iou-weighted sum

    @pl.when(h == 0)
    def _():
        part_ref[...] = jnp.zeros_like(part_ref)

    part_ref[0] += p_inter
    part_ref[1] += p_gt
    part_ref[2] += p_pred
    part_ref[3] += p_angle
    part_ref[4] += p_iou


def east_loss(gt_score, pred_score, gt_geo, pred_geo, ignored_map,
              weight_angle=WEIGHT_ANGLE, max_tile_h=None,
              vmem_budget_bytes=None):
    """Computes the EAST loss. Inputs are NCHW arrays (any float dtype).

    gt_score/pred_score/ignored_map: (B,1,H,W); gt_geo/pred_geo: (B,5,H,W).
    Returns (total_loss, classify_loss, angle_loss, iou_loss) f32 scalars.
    """
    B, _, H, W = gt_score.shape

    # --- generation-aware VMEM budget ---
    try:
        info = pltpu.get_tpu_info()
        vmem_cap = int(getattr(info, "vmem_capacity_bytes", 128 * 1024 * 1024))
    except Exception:
        vmem_cap = 128 * 1024 * 1024
    if vmem_budget_bytes is None:
        budget = int(vmem_cap * 0.70)
    else:
        budget = int(min(int(vmem_budget_bytes), int(vmem_cap * 0.85)))

    # --- tile sizing (native dtypes; no wrapper upcast, no padding copy) ---
    score_itemsize = (jnp.dtype(gt_score.dtype).itemsize
                      + jnp.dtype(pred_score.dtype).itemsize
                      + jnp.dtype(ignored_map.dtype).itemsize)
    geo_itemsize = 5 * (jnp.dtype(gt_geo.dtype).itemsize
                        + jnp.dtype(pred_geo.dtype).itemsize)
    sub = 8
    for a in (gt_score, pred_score, ignored_map, gt_geo, pred_geo):
        sub = max(sub, 32 // max(1, jnp.dtype(a.dtype).itemsize))

    stream_per_row = 2 * (score_itemsize + geo_itemsize) * W   # double-buffered
    work_per_row = _WORK_PLANES_F32 * 4 * W                    # f32 temporaries
    per_row = stream_per_row + work_per_row

    tile_h = max(1, budget // per_row)
    tile_h = min(tile_h, _MAX_TILE_H)
    if max_tile_h is not None:
        tile_h = min(tile_h, int(max_tile_h))
    if tile_h >= H:
        tile_h = H                      # full dim -> always a legal block
        b_blk = max(1, min(B, budget // max(1, per_row * H)))
        while B % b_blk != 0:           # batch blocking: pack images per step
            b_blk -= 1
    else:
        tile_h = max(sub, (tile_h // sub) * sub)
        b_blk = 1

    nh = pl.cdiv(H, tile_h)
    nb = B // b_blk
    need_mask = (H % tile_h) != 0

    fold_rows = (tile_h % 8 == 0) and (tile_h > 8)
    fold_lanes = (W % 128 == 0) and (W > 128)
    acc_r = 8 if fold_rows else tile_h
    acc_c = 128 if fold_lanes else W

    vmem_limit = max(32 << 20, int(vmem_cap * 0.9))

    kernel = functools.partial(
        _east_loss_kernel,
        h_total=H, tile_h=tile_h, need_mask=need_mask,
        fold_rows=fold_rows, fold_lanes=fold_lanes)

    partials = pl.pallas_call(
        kernel,
        out_shape=jax.ShapeDtypeStruct((nb, 5, acc_r, acc_c), jnp.float32),
        grid_spec=pltpu.PrefetchScalarGridSpec(
            num_scalar_prefetch=0,
            grid=(nb, nh),
            in_specs=[
                pl.BlockSpec((b_blk, None, tile_h, W), lambda b, h: (b, 0, h, 0)),
                pl.BlockSpec((b_blk, None, tile_h, W), lambda b, h: (b, 0, h, 0)),
                pl.BlockSpec((b_blk, None, tile_h, W), lambda b, h: (b, 0, h, 0)),
                pl.BlockSpec((b_blk, 5, tile_h, W), lambda b, h: (b, 0, h, 0)),
                pl.BlockSpec((b_blk, 5, tile_h, W), lambda b, h: (b, 0, h, 0)),
            ],
            out_specs=pl.BlockSpec((None, 5, acc_r, acc_c),
                                   lambda b, h: (b, 0, 0, 0)),
        ),
        compiler_params=pltpu.CompilerParams(
            dimension_semantics=("parallel", "arbitrary"),
            vmem_limit_bytes=vmem_limit),
    )(gt_score, pred_score, ignored_map, gt_geo, pred_geo)

    # --- scalar finalization (tiny; plain JAX) ---
    sums = jnp.sum(partials, axis=(0, 2, 3))           # (5,) f32
    inter, sum_gt, sum_pred, sum_angle, sum_iou = (sums[i] for i in range(5))

    union = sum_gt + sum_pred + EPS_DICE
    classify_loss = 1.0 - 2.0 * inter / union
    denom = jnp.where(sum_gt < 1.0, jnp.float32(1.0), sum_gt)
    angle_loss = sum_angle / denom
    iou_loss = sum_iou / denom
    geo_loss = float(weight_angle) * angle_loss + iou_loss
    # PyTorch early return: if sum(gt_score) < 1 -> 0
    total = jnp.where(sum_gt < 1.0, jnp.float32(0.0), geo_loss + classify_loss)
    return total, classify_loss, angle_loss, iou_loss


def east_loss_ref(gt_score, pred_score, gt_geo, pred_geo, ignored_map,
                  weight_angle=WEIGHT_ANGLE):
    """Pure-JAX reference mirroring the PyTorch forward."""
    gt_score = gt_score.astype(jnp.float32)
    pred_score = pred_score.astype(jnp.float32)
    gt_geo = gt_geo.astype(jnp.float32)
    pred_geo = pred_geo.astype(jnp.float32)
    ignored_map = ignored_map.astype(jnp.float32)

    sum_gt = jnp.sum(gt_score)

    pred_m = pred_score * (1.0 - ignored_map)
    inter = jnp.sum(gt_score * pred_m)
    union = jnp.sum(gt_score) + jnp.sum(pred_m) + EPS_DICE
    classify_loss = 1.0 - 2.0 * inter / union

    d1_gt, d2_gt, d3_gt, d4_gt, angle_gt = jnp.split(gt_geo, 5, axis=1)
    d1_p, d2_p, d3_p, d4_p, angle_p = jnp.split(pred_geo, 5, axis=1)
    area_gt = (d1_gt + d2_gt) * (d3_gt + d4_gt)
    area_pred = (d1_p + d2_p) * (d3_p + d4_p)
    w_union = jnp.minimum(d3_gt, d3_p) + jnp.minimum(d4_gt, d4_p)
    h_union = jnp.minimum(d1_gt, d1_p) + jnp.minimum(d2_gt, d2_p)
    area_intersect = w_union * h_union
    area_union = area_gt + area_pred - area_intersect
    iou_map = -jnp.log((area_intersect + 1.0) / (area_union + 1.0))
    angle_map = 1.0 - jnp.cos(angle_p - angle_gt)

    safe = jnp.where(sum_gt < 1.0, 1.0, sum_gt)
    angle_loss = jnp.sum(angle_map * gt_score) / safe
    iou_loss = jnp.sum(iou_map * gt_score) / safe
    geo_loss = weight_angle * angle_loss + iou_loss
    total = geo_loss + classify_loss
    return jnp.where(sum_gt < 1.0, jnp.float32(0.0), total)


if __name__ == "__main__":
    key = jax.random.PRNGKey(0)

    def make_inputs(key, B, H, W, dtype=jnp.float32):
        k1, k2, k3, k4, k5 = jax.random.split(key, 5)
        gt_score = (jax.random.uniform(k1, (B, 1, H, W)) > 0.5).astype(dtype)
        pred_score = jax.random.uniform(k2, (B, 1, H, W)).astype(dtype)
        gt_geo = (jax.random.uniform(k3, (B, 5, H, W)) * 8.0).astype(dtype)
        pred_geo = (jax.random.uniform(k4, (B, 5, H, W)) * 8.0).astype(dtype)
        ignored = (jax.random.uniform(k5, (B, 1, H, W)) > 0.9).astype(dtype)
        return gt_score, pred_score, gt_geo, pred_geo, ignored

    # Test 1: small shapes consistent with the module (B=2, C in {1,5}, 16x16);
    # exercises batch-blocking (b_blk=2, single grid step).
    k_a, k_b, k_c = jax.random.split(key, 3)
    inp = make_inputs(k_a, 2, 16, 16)
    total, dice, angle, iou = east_loss(*inp)
    total = jax.block_until_ready(total)
    ref = east_loss_ref(*inp)
    assert jnp.allclose(total, ref, rtol=1e-4, atol=1e-5), (total, ref)

    # Test 2: ragged H with a forced small tile -> exercises the in-kernel
    # mask, multiple row tiles and multiple parallel batch blocks.
    inp2 = make_inputs(k_b, 2, 20, 128)
    total2, _, _, _ = east_loss(*inp2, max_tile_h=8)
    total2 = jax.block_until_ready(total2)
    ref2 = east_loss_ref(*inp2)
    assert jnp.allclose(total2, ref2, rtol=1e-4, atol=1e-5), (total2, ref2)

    # Test 3: sum(gt_score) < 1 early-return branch.
    gt0 = jnp.zeros_like(inp[0])
    total3, _, _, _ = east_loss(gt0, inp[1], inp[2], inp[3], inp[4])
    total3 = jax.block_until_ready(total3)
    assert jnp.allclose(total3, 0.0, atol=1e-6), total3

    # Test 4: bf16 inputs streamed natively (cast to f32 inside the kernel),
    # 16-row tiles (bf16 sublane multiple) and lane folding (W=256).
    inp4 = make_inputs(k_c, 2, 32, 256, dtype=jnp.bfloat16)
    total4, _, _, _ = east_loss(*inp4, max_tile_h=16)
    total4 = jax.block_until_ready(total4)
    ref4 = east_loss_ref(*inp4)
    assert jnp.allclose(total4, ref4, rtol=1e-3, atol=1e-4), (total4, ref4)

    print("KERNEL_OK")
</pallas_src>

<mosaic_0001>
module attributes {stable_mosaic.version = 11 : i64} {
  func.func @_east_loss_kernel(%arg0: i32, %arg1: i32, %arg2: memref<2x1x16x16xf32, #tpu.memory_space<vmem>>, %arg3: memref<2x1x16x16xf32, #tpu.memory_space<vmem>>, %arg4: memref<2x1x16x16xf32, #tpu.memory_space<vmem>>, %arg5: memref<2x5x16x16xf32, #tpu.memory_space<vmem>>, %arg6: memref<2x5x16x16xf32, #tpu.memory_space<vmem>>, %arg7: memref<1x5x8x16xf32, #tpu.memory_space<vmem>>) attributes {dimension_semantics = [#tpu.dimension_semantics<parallel>, #tpu.dimension_semantics<arbitrary>], iteration_bounds = array<i64: 1, 1>, scalar_prefetch = 0 : i64, scratch_operands = 0 : i64, tpu.core_type = #tpu.core_type<tc>, window_params = [{transform_indices = @transform_0, window_bounds = array<i64: 2, 1, 16, 16>}, {transform_indices = @transform_1, window_bounds = array<i64: 2, 1, 16, 16>}, {transform_indices = @transform_2, window_bounds = array<i64: 2, 1, 16, 16>}, {transform_indices = @transform_3, window_bounds = array<i64: 2, 5, 16, 16>}, {transform_indices = @transform_4, window_bounds = array<i64: 2, 5, 16, 16>}, {transform_indices = @transform_5, window_bounds = array<i64: 1, 5, 8, 16>}]} {
    %c0 = arith.constant 0 : index
    %c0_0 = arith.constant 0 : index
    %c0_1 = arith.constant 0 : index
    %c0_2 = arith.constant 0 : index
    %0 = vector.load %arg2[%c0, %c0_0, %c0_1, %c0_2] : memref<2x1x16x16xf32, #tpu.memory_space<vmem>>, vector<2x1x16x16xf32>
    %1 = vector.shape_cast %0 : vector<2x1x16x16xf32> to vector<2x16x16xf32>
    %c0_3 = arith.constant 0 : index
    %c0_4 = arith.constant 0 : index
    %c0_5 = arith.constant 0 : index
    %c0_6 = arith.constant 0 : index
    %2 = vector.load %arg3[%c0_3, %c0_4, %c0_5, %c0_6] : memref<2x1x16x16xf32, #tpu.memory_space<vmem>>, vector<2x1x16x16xf32>
    %3 = vector.shape_cast %2 : vector<2x1x16x16xf32> to vector<2x16x16xf32>
    %c0_7 = arith.constant 0 : index
    %c0_8 = arith.constant 0 : index
    %c0_9 = arith.constant 0 : index
    %c0_10 = arith.constant 0 : index
    %4 = vector.load %arg4[%c0_7, %c0_8, %c0_9, %c0_10] : memref<2x1x16x16xf32, #tpu.memory_space<vmem>>, vector<2x1x16x16xf32>
    %5 = vector.shape_cast %4 : vector<2x1x16x16xf32> to vector<2x16x16xf32>
    %cst = arith.constant 1.000000e+00 : f32
    %6 = vector.broadcast %cst : f32 to vector<2x16x16xf32>
    %7 = arith.subf %6, %5 : vector<2x16x16xf32>
    %8 = arith.mulf %3, %7 : vector<2x16x16xf32>
    %c0_11 = arith.constant 0 : index
    %c0_12 = arith.constant 0 : index
    %c0_13 = arith.constant 0 : index
    %c0_14 = arith.constant 0 : index
    %9 = vector.load %arg5[%c0_11, %c0_12, %c0_13, %c0_14] : memref<2x5x16x16xf32, #tpu.memory_space<vmem>>, vector<2x5x16x16xf32>
    %c0_15 = arith.constant 0 : index
    %c0_16 = arith.constant 0 : index
    %c0_17 = arith.constant 0 : index
    %c0_18 = arith.constant 0 : index
    %10 = vector.load %arg6[%c0_15, %c0_16, %c0_17, %c0_18] : memref<2x5x16x16xf32, #tpu.memory_space<vmem>>, vector<2x5x16x16xf32>
    %11 = vector.extract_strided_slice %9 {offsets = [0, 0, 0, 0], sizes = [2, 1, 16, 16], strides = [1, 1, 1, 1]} : vector<2x5x16x16xf32> to vector<2x1x16x16xf32>
    %12 = vector.shape_cast %11 : vector<2x1x16x16xf32> to vector<2x16x16xf32>
    %13 = vector.extract_strided_slice %9 {offsets = [0, 1, 0, 0], sizes = [2, 1, 16, 16], strides = [1, 1, 1, 1]} : vector<2x5x16x16xf32> to vector<2x1x16x16xf32>
    %14 = vector.shape_cast %13 : vector<2x1x16x16xf32> to vector<2x16x16xf32>
    %15 = vector.extract_strided_slice %9 {offsets = [0, 2, 0, 0], sizes = [2, 1, 16, 16], strides = [1, 1, 1, 1]} : vector<2x5x16x16xf32> to vector<2x1x16x16xf32>
    %16 = vector.shape_cast %15 : vector<2x1x16x16xf32> to vector<2x16x16xf32>
    %17 = vector.extract_strided_slice %9 {offsets = [0, 3, 0, 0], sizes = [2, 1, 16, 16], strides = [1, 1, 1, 1]} : vector<2x5x16x16xf32> to vector<2x1x16x16xf32>
    %18 = vector.shape_cast %17 : vector<2x1x16x16xf32> to vector<2x16x16xf32>
    %19 = vector.extract_strided_slice %9 {offsets = [0, 4, 0, 0], sizes = [2, 1, 16, 16], strides = [1, 1, 1, 1]} : vector<2x5x16x16xf32> to vector<2x1x16x16xf32>
    %20 = vector.shape_cast %19 : vector<2x1x16x16xf32> to vector<2x16x16xf32>
    %21 = vector.extract_strided_slice %10 {offsets = [0, 0, 0, 0], sizes = [2, 1, 16, 16], strides = [1, 1, 1, 1]} : vector<2x5x16x16xf32> to vector<2x1x16x16xf32>
    %22 = vector.shape_cast %21 : vector<2x1x16x16xf32> to vector<2x16x16xf32>
    %23 = vector.extract_strided_slice %10 {offsets = [0, 1, 0, 0], sizes = [2, 1, 16, 16], strides = [1, 1, 1, 1]} : vector<2x5x16x16xf32> to vector<2x1x16x16xf32>
    %24 = vector.shape_cast %23 : vector<2x1x16x16xf32> to vector<2x16x16xf32>
    %25 = vector.extract_strided_slice %10 {offsets = [0, 2, 0, 0], sizes = [2, 1, 16, 16], strides = [1, 1, 1, 1]} : vector<2x5x16x16xf32> to vector<2x1x16x16xf32>
    %26 = vector.shape_cast %25 : vector<2x1x16x16xf32> to vector<2x16x16xf32>
    %27 = vector.extract_strided_slice %10 {offsets = [0, 3, 0, 0], sizes = [2, 1, 16, 16], strides = [1, 1, 1, 1]} : vector<2x5x16x16xf32> to vector<2x1x16x16xf32>
    %28 = vector.shape_cast %27 : vector<2x1x16x16xf32> to vector<2x16x16xf32>
    %29 = vector.extract_strided_slice %10 {offsets = [0, 4, 0, 0], sizes = [2, 1, 16, 16], strides = [1, 1, 1, 1]} : vector<2x5x16x16xf32> to vector<2x1x16x16xf32>
    %30 = vector.shape_cast %29 : vector<2x1x16x16xf32> to vector<2x16x16xf32>
    %31 = arith.addf %12, %14 : vector<2x16x16xf32>
    %32 = arith.addf %16, %18 : vector<2x16x16xf32>
    %33 = arith.mulf %31, %32 : vector<2x16x16xf32>
    %34 = arith.addf %22, %24 : vector<2x16x16xf32>
    %35 = arith.addf %26, %28 : vector<2x16x16xf32>
    %36 = arith.mulf %34, %35 : vector<2x16x16xf32>
    %37 = arith.minimumf %16, %26 : vector<2x16x16xf32>
    %38 = arith.minimumf %18, %28 : vector<2x16x16xf32>
    %39 = arith.addf %37, %38 : vector<2x16x16xf32>
    %40 = arith.minimumf %12, %22 : vector<2x16x16xf32>
    %41 = arith.minimumf %14, %24 : vector<2x16x16xf32>
    %42 = arith.addf %40, %41 : vector<2x16x16xf32>
    %43 = arith.mulf %39, %42 : vector<2x16x16xf32>
    %44 = arith.addf %33, %36 : vector<2x16x16xf32>
    %45 = arith.subf %44, %43 : vector<2x16x16xf32>
    %cst_19 = arith.constant 1.000000e+00 : f32
    %46 = vector.broadcast %cst_19 : f32 to vector<2x16x16xf32>
    %47 = arith.addf %43, %46 : vector<2x16x16xf32>
    %cst_20 = arith.constant 1.000000e+00 : f32
    %48 = vector.broadcast %cst_20 : f32 to vector<2x16x16xf32>
    %49 = arith.addf %45, %48 : vector<2x16x16xf32>
    %50 = arith.divf %47, %49 : vector<2x16x16xf32>
    %51 = math.log %50 : vector<2x16x16xf32>
    %cst_21 = arith.constant 0.000000e+00 : f32
    %52 = vector.broadcast %cst_21 : f32 to vector<2x16x16xf32>
    %53 = arith.subf %52, %51 : vector<2x16x16xf32>
    %54 = arith.subf %30, %20 : vector<2x16x16xf32>
    %55 = math.cos %54 : vector<2x16x16xf32>
    %cst_22 = arith.constant 1.000000e+00 : f32
    %56 = vector.broadcast %cst_22 : f32 to vector<2x16x16xf32>
    %57 = arith.subf %56, %55 : vector<2x16x16xf32>
    %58 = arith.mulf %1, %8 : vector<2x16x16xf32>
    %cst_23 = arith.constant dense<0.000000e+00> : vector<16x16xf32>
    %59 = vector.multi_reduction <add>, %58, %cst_23 [0] : vector<2x16x16xf32> to vector<16x16xf32>
    %60 = vector.shape_cast %59 : vector<16x16xf32> to vector<2x8x16xf32>
    %cst_24 = arith.constant dense<0.000000e+00> : vector<8x16xf32>
    %61 = vector.multi_reduction <add>, %60, %cst_24 [0] : vector<2x8x16xf32> to vector<8x16xf32>
    %cst_25 = arith.constant dense<0.000000e+00> : vector<16x16xf32>
    %62 = vector.multi_reduction <add>, %1, %cst_25 [0] : vector<2x16x16xf32> to vector<16x16xf32>
    %63 = vector.shape_cast %62 : vector<16x16xf32> to vector<2x8x16xf32>
    %cst_26 = arith.constant dense<0.000000e+00> : vector<8x16xf32>
    %64 = vector.multi_reduction <add>, %63, %cst_26 [0] : vector<2x8x16xf32> to vector<8x16xf32>
    %cst_27 = arith.constant dense<0.000000e+00> : vector<16x16xf32>
    %65 = vector.multi_reduction <add>, %8, %cst_27 [0] : vector<2x16x16xf32> to vector<16x16xf32>
    %66 = vector.shape_cast %65 : vector<16x16xf32> to vector<2x8x16xf32>
    %cst_28 = arith.constant dense<0.000000e+00> : vector<8x16xf32>
    %67 = vector.multi_reduction <add>, %66, %cst_28 [0] : vector<2x8x16xf32> to vector<8x16xf32>
    %68 = arith.mulf %57, %1 : vector<2x16x16xf32>
    %cst_29 = arith.constant dense<0.000000e+00> : vector<16x16xf32>
    %69 = vector.multi_reduction <add>, %68, %cst_29 [0] : vector<2x16x16xf32> to vector<16x16xf32>
    %70 = vector.shape_cast %69 : vector<16x16xf32> to vector<2x8x16xf32>
    %cst_30 = arith.constant dense<0.000000e+00> : vector<8x16xf32>
    %71 = vector.multi_reduction <add>, %70, %cst_30 [0] : vector<2x8x16xf32> to vector<8x16xf32>
    %72 = arith.mulf %53, %1 : vector<2x16x16xf32>
    %cst_31 = arith.constant dense<0.000000e+00> : vector<16x16xf32>
    %73 = vector.multi_reduction <add>, %72, %cst_31 [0] : vector<2x16x16xf32> to vector<16x16xf32>
    %74 = vector.shape_cast %73 : vector<16x16xf32> to vector<2x8x16xf32>
    %cst_32 = arith.constant dense<0.000000e+00> : vector<8x16xf32>
    %75 = vector.multi_reduction <add>, %74, %cst_32 [0] : vector<2x8x16xf32> to vector<8x16xf32>
    %c0_i32 = arith.constant 0 : i32
    %76 = arith.cmpi eq, %arg1, %c0_i32 : i32
    %77 = arith.extui %76 : i1 to i32
    %c0_i32_33 = arith.constant 0 : i32
    %78 = arith.cmpi ne, %77, %c0_i32_33 : i32
    scf.if %78 {
      %cst_70 = arith.constant 0.000000e+00 : f32
      %109 = vector.broadcast %cst_70 : f32 to vector<5x8x16xf32>
      %c0_71 = arith.constant 0 : index
      %c0_72 = arith.constant 0 : index
      %c0_73 = arith.constant 0 : index
      %c0_74 = arith.constant 0 : index
      %110 = vector.load %arg7[%c0_71, %c0_72, %c0_73, %c0_74] : memref<1x5x8x16xf32, #tpu.memory_space<vmem>>, vector<1x5x8x16xf32>
      %111 = vector.shape_cast %110 : vector<1x5x8x16xf32> to vector<5x8x16xf32>
      %112 = vector.shape_cast %109 : vector<5x8x16xf32> to vector<1x5x8x16xf32>
      tpu.vector_store %arg7[%c0_71, %c0_72, %c0_73, %c0_74], %112 {strides = array<i32>} : memref<1x5x8x16xf32, #tpu.memory_space<vmem>>, vector<1x5x8x16xf32>,
    } else {
    }
    %c0_34 = arith.constant 0 : index
    %c0_35 = arith.constant 0 : index
    %c0_36 = arith.constant 0 : index
    %c0_37 = arith.constant 0 : index
    %79 = vector.load %arg7[%c0_34, %c0_35, %c0_36, %c0_37] : memref<1x5x8x16xf32, #tpu.memory_space<vmem>>, vector<1x1x8x16xf32>
    %80 = vector.shape_cast %79 : vector<1x1x8x16xf32> to vector<8x16xf32>
    %81 = arith.addf %80, %61 : vector<8x16xf32>
    %c0_38 = arith.constant 0 : index
    %c0_39 = arith.constant 0 : index
    %c0_40 = arith.constant 0 : index
    %c0_41 = arith.constant 0 : index
    %82 = vector.load %arg7[%c0_38, %c0_39, %c0_40, %c0_41] : memref<1x5x8x16xf32, #tpu.memory_space<vmem>>, vector<1x1x8x16xf32>
    %83 = vector.shape_cast %82 : vector<1x1x8x16xf32> to vector<8x16xf32>
    %84 = vector.shape_cast %81 : vector<8x16xf32> to vector<1x1x8x16xf32>
    tpu.vector_store %arg7[%c0_38, %c0_39, %c0_40, %c0_41], %84 {strides = array<i32>} : memref<1x5x8x16xf32, #tpu.memory_space<vmem>>, vector<1x1x8x16xf32>,
    %c0_42 = arith.constant 0 : index
    %c1 = arith.constant 1 : index
    %c0_43 = arith.constant 0 : index
    %c0_44 = arith.constant 0 : index
    %85 = vector.load %arg7[%c0_42, %c1, %c0_43, %c0_44] : memref<1x5x8x16xf32, #tpu.memory_space<vmem>>, vector<1x1x8x16xf32>
    %86 = vector.shape_cast %85 : vector<1x1x8x16xf32> to vector<8x16xf32>
    %87 = arith.addf %86, %64 : vector<8x16xf32>
    %c0_45 = arith.constant 0 : index
    %c1_46 = arith.constant 1 : index
    %c0_47 = arith.constant 0 : index
    %c0_48 = arith.constant 0 : index
    %88 = vector.load %arg7[%c0_45, %c1_46, %c0_47, %c0_48] : memref<1x5x8x16xf32, #tpu.memory_space<vmem>>, vector<1x1x8x16xf32>
    %89 = vector.shape_cast %88 : vector<1x1x8x16xf32> to vector<8x16xf32>
    %90 = vector.shape_cast %87 : vector<8x16xf32> to vector<1x1x8x16xf32>
    tpu.vector_store %arg7[%c0_45, %c1_46, %c0_47, %c0_48], %90 {strides = array<i32>} : memref<1x5x8x16xf32, #tpu.memory_space<vmem>>, vector<1x1x8x16xf32>,
    %c0_49 = arith.constant 0 : index
    %c2 = arith.constant 2 : index
    %c0_50 = arith.constant 0 : index
    %c0_51 = arith.constant 0 : index
    %91 = vector.load %arg7[%c0_49, %c2, %c0_50, %c0_51] : memref<1x5x8x16xf32, #tpu.memory_space<vmem>>, vector<1x1x8x16xf32>
    %92 = vector.shape_cast %91 : vector<1x1x8x16xf32> to vector<8x16xf32>
    %93 = arith.addf %92, %67 : vector<8x16xf32>
    %c0_52 = arith.constant 0 : index
    %c2_53 = arith.constant 2 : index
    %c0_54 = arith.constant 0 : index
    %c0_55 = arith.constant 0 : index
    %94 = vector.load %arg7[%c0_52, %c2_53, %c0_54, %c0_55] : memref<1x5x8x16xf32, #tpu.memory_space<vmem>>, vector<1x1x8x16xf32>
    %95 = vector.shape_cast %94 : vector<1x1x8x16xf32> to vector<8x16xf32>
    %96 = vector.shape_cast %93 : vector<8x16xf32> to vector<1x1x8x16xf32>
    tpu.vector_store %arg7[%c0_52, %c2_53, %c0_54, %c0_55], %96 {strides = array<i32>} : memref<1x5x8x16xf32, #tpu.memory_space<vmem>>, vector<1x1x8x16xf32>,
    %c0_56 = arith.constant 0 : index
    %c3 = arith.constant 3 : index
    %c0_57 = arith.constant 0 : index
    %c0_58 = arith.constant 0 : index
    %97 = vector.load %arg7[%c0_56, %c3, %c0_57, %c0_58] : memref<1x5x8x16xf32, #tpu.memory_space<vmem>>, vector<1x1x8x16xf32>
    %98 = vector.shape_cast %97 : vector<1x1x8x16xf32> to vector<8x16xf32>
    %99 = arith.addf %98, %71 : vector<8x16xf32>
    %c0_59 = arith.constant 0 : index
    %c3_60 = arith.constant 3 : index
    %c0_61 = arith.constant 0 : index
    %c0_62 = arith.constant 0 : index
    %100 = vector.load %arg7[%c0_59, %c3_60, %c0_61, %c0_62] : memref<1x5x8x16xf32, #tpu.memory_space<vmem>>, vector<1x1x8x16xf32>
    %101 = vector.shape_cast %100 : vector<1x1x8x16xf32> to vector<8x16xf32>
    %102 = vector.shape_cast %99 : vector<8x16xf32> to vector<1x1x8x16xf32>
    tpu.vector_store %arg7[%c0_59, %c3_60, %c0_61, %c0_62], %102 {strides = array<i32>} : memref<1x5x8x16xf32, #tpu.memory_space<vmem>>, vector<1x1x8x16xf32>,
    %c0_63 = arith.constant 0 : index
    %c4 = arith.constant 4 : index
    %c0_64 = arith.constant 0 : index
    %c0_65 = arith.constant 0 : index
    %103 = vector.load %arg7[%c0_63, %c4, %c0_64, %c0_65] : memref<1x5x8x16xf32, #tpu.memory_space<vmem>>, vector<1x1x8x16xf32>
    %104 = vector.shape_cast %103 : vector<1x1x8x16xf32> to vector<8x16xf32>
    %105 = arith.addf %104, %75 : vector<8x16xf32>
    %c0_66 = arith.constant 0 : index
    %c4_67 = arith.constant 4 : index
    %c0_68 = arith.constant 0 : index
    %c0_69 = arith.constant 0 : index
    %106 = vector.load %arg7[%c0_66, %c4_67, %c0_68, %c0_69] : memref<1x5x8x16xf32, #tpu.memory_space<vmem>>, vector<1x1x8x16xf32>
    %107 = vector.shape_cast %106 : vector<1x1x8x16xf32> to vector<8x16xf32>
    %108 = vector.shape_cast %105 : vector<8x16xf32> to vector<1x1x8x16xf32>
    tpu.vector_store %arg7[%c0_66, %c4_67, %c0_68, %c0_69], %108 {strides = array<i32>} : memref<1x5x8x16xf32, #tpu.memory_space<vmem>>, vector<1x1x8x16xf32>,
    return
  }
  func.func @transform_0(%arg0: i32, %arg1: i32) -> (i32, i32, i32, i32) {
    %c0_i32 = arith.constant 0 : i32
    %c0_i32_0 = arith.constant 0 : i32
    %c0_i32_1 = arith.constant 0 : i32
    return %arg0, %c0_i32, %arg1, %c0_i32_0 : i32, i32, i32, i32
  }
  func.func @transform_1(%arg0: i32, %arg1: i32) -> (i32, i32, i32, i32) {
    %c0_i32 = arith.constant 0 : i32
    %c0_i32_0 = arith.constant 0 : i32
    %c0_i32_1 = arith.constant 0 : i32
    return %arg0, %c0_i32, %arg1, %c0_i32_0 : i32, i32, i32, i32
  }
  func.func @transform_2(%arg0: i32, %arg1: i32) -> (i32, i32, i32, i32) {
    %c0_i32 = arith.constant 0 : i32
    %c0_i32_0 = arith.constant 0 : i32
    %c0_i32_1 = arith.constant 0 : i32
    return %arg0, %c0_i32, %arg1, %c0_i32_0 : i32, i32, i32, i32
  }
  func.func @transform_3(%arg0: i32, %arg1: i32) -> (i32, i32, i32, i32) {
    %c0_i32 = arith.constant 0 : i32
    %c0_i32_0 = arith.constant 0 : i32
    %c0_i32_1 = arith.constant 0 : i32
    return %arg0, %c0_i32, %arg1, %c0_i32_0 : i32, i32, i32, i32
  }
  func.func @transform_4(%arg0: i32, %arg1: i32) -> (i32, i32, i32, i32) {
    %c0_i32 = arith.constant 0 : i32
    %c0_i32_0 = arith.constant 0 : i32
    %c0_i32_1 = arith.constant 0 : i32
    return %arg0, %c0_i32, %arg1, %c0_i32_0 : i32, i32, i32, i32
  }
  func.func @transform_5(%arg0: i32, %arg1: i32) -> (i32, i32, i32, i32) {
    %c0_i32 = arith.constant 0 : i32
    %c0_i32_0 = arith.constant 0 : i32
    %c0_i32_1 = arith.constant 0 : i32
    %c0_i32_2 = arith.constant 0 : i32
    return %arg0, %c0_i32, %c0_i32_0, %c0_i32_1 : i32, i32, i32, i32
  }
}

</mosaic_0001>

<bundles_post_ra>
// kernel: tpu_custom_call.1
= control target key start
LH: loop header
LB: loop body
LE: loop exit
PB: predicated region body
PF: predicated region fallthrough
CT: control target
= control target key end

     0   :  { %10 = vsyncpa [#allocation3], 0  ;;  %s1593_s0 = inlined_call_operand.hbm [shape: f32[2,1,16,16], index: 0, kind: input, shape index: {}]   ;;  %s1594_s1 = inlined_call_operand.hbm [shape: f32[2,1,16,16], index: 1, kind: input, shape index: {}]   ;;  %s1595_s2 = inlined_call_operand.hbm [shape: f32[2,1,16,16], index: 2, kind: input, shape index: {}]   ;;  %s1596_s3 = inlined_call_operand.hbm [shape: f32[2,5,16,16], index: 3, kind: input, shape index: {}]   ;;  %s1597_s4 = inlined_call_operand.hbm [shape: f32[2,5,16,16], index: 4, kind: input, shape index: {}]   ;;  %s1598_s5 = inlined_call_operand.hbm [shape: f32[1,5,8,16], index: 5, kind: output, shape index: {}]  }
   0x1   :  { %11 = vsyncpa [#allocation6], 0 }
   0x2   :  { %12 = vsyncpa [#allocation9], 0 }
   0x3   :  { %13 = vsyncpa [#allocation4], 0  ;;  %s985_s18 = smov [#allocation5]   ;;  %s986_s20 = smov [#allocation8]  }
   0x4   :  { %s31_s19 = sshll.u32 %s985_s18, 4  ;;  %s55_s21 = sshll.u32 %s986_s20, 4  ;;  %s32_s19 = int_to_ptr.vmem [resolvable:$true] %s31_s19  ;;  %s1030_s21 = int_to_ptr.vmem [resolvable:$true] %s55_s21 }
   0x5   :  { %s845_s24 = scalar_lea.hbm %s1594_s1, 512 }
   0x6   :  { %p846_p0 = scmp.ne.s32.totalorder %s1594_s1, %s845_s24  ;;  %p849_p1 = scmp.lt.u32.totalorder %s845_s24, %s1594_s1 }
   0x8   :  { %p851_p2 = pnand %p849_p1, %p846_p0 }
   0xa   :  { %854 = shalt.err (!%p851_p2)
}
   0xb   :  { %s855_s29 = scalar_lea.vmem %s32_s19, 512  ;;  %p860_p4 = scmp.lt.s32.totalorder %s32_s19, %s32_s19 }
   0xc   :  { %p856_p3 = scmp.ne.s32.totalorder %s32_s19, %s855_s29  ;;  %p861_p5 = scmp.lt.s32.totalorder %s855_s29, %s855_s29 }
   0xe   :  { %p862_p6 = por %p861_p5, %p860_p4 }
  0x10   :  { %p863_p7 = pnand %p862_p6, %p856_p3 }
  0x12   :  { %866 = shalt.err (!%p863_p7)
}
  0x13   :  { %s987_s30 = smov 128   ;;  %s988_s6 = smov 8  }
  0x14   :  { %37 = dma.hbm_to_vmem [thread:$0]  %s1594_s1, 512, %s32_s19, [#allocation6], %s987_s30, %s987_s30, %s988_s6  }
  0x15   :  { %s867_s11 = scalar_lea.hbm %s1596_s3, 2560 }
  0x16   :  { %p868_p8 = scmp.ne.s32.totalorder %s1596_s3, %s867_s11  ;;  %p871_p9 = scmp.lt.u32.totalorder %s867_s11, %s1596_s3 }
  0x18   :  { %p873_p10 = pnand %p871_p9, %p868_p8 }
  0x1a   :  { %876 = shalt.err (!%p873_p10)
}
  0x1b   :  { %s877_s16 = scalar_lea.vmem %s1030_s21, 2560  ;;  %p882_p12 = scmp.lt.s32.totalorder %s1030_s21, %s1030_s21 }
  0x1c   :  { %p878_p11 = scmp.ne.s32.totalorder %s1030_s21, %s877_s16  ;;  %p883_p13 = scmp.lt.s32.totalorder %s877_s16, %s877_s16 }
  0x1e   :  { %p884_p0 = por %p883_p13, %p882_p12 }
  0x20   :  { %p885_p1 = pnand %p884_p0, %p878_p11 }
  0x22   :  { %888 = shalt.err (!%p885_p1)
}
  0x23   :  { %61 = dma.hbm_to_vmem [thread:$0]  %s1596_s3, 2560, %s1030_s21, [#allocation9], %s987_s30, %s987_s30, %s988_s6  }
  0x24   :  { %s989_s18 = smov [#allocation2]   ;;  %s990_s20 = smov [#allocation7]  }
  0x25   :  { %s19_s19 = sshll.u32 %s989_s18, 4  ;;  %s43_s22 = sshll.u32 %s990_s20, 4  ;;  %s20_s19 = int_to_ptr.vmem [resolvable:$true] %s19_s19  ;;  %s1067_s22 = int_to_ptr.vmem [resolvable:$true] %s43_s22 }
  0x26   :  { %s889_s25 = scalar_lea.hbm %s1593_s0, 512 }
  0x27   :  { %p890_p2 = scmp.ne.s32.totalorder %s1593_s0, %s889_s25  ;;  %p893_p3 = scmp.lt.u32.totalorder %s889_s25, %s1593_s0 }
  0x29   :  { %p895_p4 = pnand %p893_p3, %p890_p2 }
  0x2b   :  { %898 = shalt.err (!%p895_p4)
}
  0x2c   :  { %s899_s3 = scalar_lea.vmem %s20_s19, 512  ;;  %p904_p6 = scmp.lt.s32.totalorder %s20_s19, %s20_s19 }
  0x2d   :  { %p900_p5 = scmp.ne.s32.totalorder %s20_s19, %s899_s3  ;;  %p905_p7 = scmp.lt.s32.totalorder %s899_s3, %s899_s3 }
  0x2f   :  { %p906_p8 = por %p905_p7, %p904_p6 }
  0x31   :  { %p907_p9 = pnand %p906_p8, %p900_p5 }
  0x33   :  { %910 = shalt.err (!%p907_p9)
}
  0x34   :  { %25 = dma.hbm_to_vmem [thread:$0]  %s1593_s0, 512, %s20_s19, [#allocation3], %s987_s30, %s987_s30, %s988_s6  }
  0x35   :  { %s911_s10 = scalar_lea.hbm %s1595_s2, 512 }
  0x36   :  { %p912_p10 = scmp.ne.s32.totalorder %s1595_s2, %s911_s10  ;;  %p915_p11 = scmp.lt.u32.totalorder %s911_s10, %s1595_s2 }
  0x38   :  { %p917_p12 = pnand %p915_p11, %p912_p10 }
  0x3a   :  { %920 = shalt.err (!%p917_p12)
}
  0x3b   :  { %s921_s15 = scalar_lea.vmem %s1067_s22, 512  ;;  %p926_p0 = scmp.lt.s32.totalorder %s1067_s22, %s1067_s22 }
  0x3c   :  { %p922_p13 = scmp.ne.s32.totalorder %s1067_s22, %s921_s15  ;;  %p927_p1 = scmp.lt.s32.totalorder %s921_s15, %s921_s15 }
  0x3e   :  { %p928_p2 = por %p927_p1, %p926_p0 }
  0x40   :  { %p929_p3 = pnand %p928_p2, %p922_p13 }
  0x42   :  { %932 = shalt.err (!%p929_p3)
}
  0x43   :  { %49 = dma.hbm_to_vmem [thread:$0]  %s1595_s2, 512, %s1067_s22, [#allocation6], %s987_s30, %s987_s30, %s988_s6  }
  0x44   :  { %s991_s1 = smov [#allocation10]   ;;  %s933_s20 = scalar_lea.hbm %s1597_s4, 2560 }
  0x45   :  { %s67_s17 = sshll.u32 %s991_s1, 4  ;;  %p934_p4 = scmp.ne.s32.totalorder %s1597_s4, %s933_s20  ;;  %s68_s17 = int_to_ptr.vmem [resolvable:$true] %s67_s17 }
  0x46   :  { %p937_p5 = scmp.lt.u32.totalorder %s933_s20, %s1597_s4 }
  0x48   :  { %p939_p6 = pnand %p937_p5, %p934_p4 }
  0x4a   :  { %942 = shalt.err (!%p939_p6)
}
  0x4b   :  { %s943_s27 = scalar_lea.vmem %s68_s17, 2560  ;;  %p948_p8 = scmp.lt.s32.totalorder %s68_s17, %s68_s17 }
  0x4c   :  { %p944_p7 = scmp.ne.s32.totalorder %s68_s17, %s943_s27  ;;  %p949_p9 = scmp.lt.s32.totalorder %s943_s27, %s943_s27 }
  0x4e   :  { %p950_p10 = por %p949_p9, %p948_p8 }
  0x50   :  { %p951_p11 = pnand %p950_p10, %p944_p7 }
  0x52   :  { %954 = shalt.err (!%p951_p11)
}
  0x53   :  { %73 = dma.hbm_to_vmem [thread:$0]  %s1597_s4, 2560, %s68_s17, [#allocation9], %s987_s30, %s987_s30, %s988_s6  }
  0x54   :  { %977 = dma.done.wait [#allocation3], 512  }
  0x55   :  { %978 = vsyncadd [#allocation3], 4294966784 }
  0x56   :  { %979 = dma.done.wait [#allocation6], 1024  }
  0x57   :  { %980 = vsyncadd [#allocation6], 4294966272 }
  0x58   :  { %981 = dma.done.wait [#allocation9], 5120  }
  0x59   :  { %982 = vsyncadd [#allocation9], 4294962176  ;;  %vm661_vm0 = vcmask 130048   ;;  %v992_v0 = vmov 0.0   ;;  %v89_v1 = vld [vmem:[#allocation2] sm:$0xff]  ;;  %v90_v2 = vld [vmem:[#allocation2 + $0x8] sm:$0xff] }
  0x5a   :  { %719 = vst.msk [vmem:[#allocation11] sm:$0xff] %vm661_vm0, %v992_v0  ;;  %720 = vst.msk [vmem:[#allocation11 + $0x8] sm:$0xff] %vm661_vm0, %v992_v0  ;;  %v91_v3 = vld [vmem:[#allocation2 + $0x10] sm:$0xff]  ;;  %v92_v4 = vld [vmem:[#allocation2 + $0x18] sm:$0xff]  ;;  %v671_v7 = vsel %vm661_vm0, %v89_v1, 0.0  ;;  %v674_v9 = vsel %vm661_vm0, %v90_v2, 0.0 }
  0x5b   :  { %721 = vst.msk [vmem:[#allocation11 + $0x10] sm:$0xff] %vm661_vm0, %v992_v0  ;;  %722 = vst.msk [vmem:[#allocation11 + $0x18] sm:$0xff] %vm661_vm0, %v992_v0  ;;  %v93_v5 = vld [vmem:[#allocation5] sm:$0xff]  ;;  %v94_v6 = vld [vmem:[#allocation5 + $0x8] sm:$0xff]  ;;  %v672_v8 = vsel %vm661_vm0, %v91_v3, 0.0  ;;  %v675_v14 = vsel %vm661_vm0, %v92_v4, 0.0 }
  0x5c   :  { %723 = vst.msk [vmem:[#allocation11 + $0x20] sm:$0xff] %vm661_vm0, %v992_v0  ;;  %v95_v10 = vld [vmem:[#allocation5 + $0x10] sm:$0xff]  ;;  %v96_v11 = vld [vmem:[#allocation5 + $0x18] sm:$0xff]  ;;  %v97_v12 = vld [vmem:[#allocation7] sm:$0xff]  ;;  %v673_v13 = vadd.f32 %v672_v8, %v671_v7  ;;  %v676_v19 = vadd.f32 %v675_v14, %v674_v9  ;;  %s999_s4 = smov [#allocation11]  }
  0x5d   :  { %v98_v15 = vld [vmem:[#allocation7 + $0x8] sm:$0xff]  ;;  %v99_v16 = vld [vmem:[#allocation7 + $0x10] sm:$0xff]  ;;  %v100_v17 = vld [vmem:[#allocation7 + $0x18] sm:$0xff]  ;;  %v101_v18 = vsub.f32 1.0, %v97_v12  ;;  %s748_s28 = sshll.u32 %s999_s4, 4  ;;  %s749_s28 = int_to_ptr.vmem [resolvable:$true] %s748_s28 }
  0x5e   :  { %v102_v20 = vsub.f32 1.0, %v98_v15  ;;  %v103_v21 = vsub.f32 1.0, %v99_v16  ;;  %v104_v22 = vsub.f32 1.0, %v100_v17  ;;  %v677_v23 = vsel %vm661_vm0, %v673_v13, 0.0  ;;  %v117_v27 = vld [vmem:[#allocation8 + $0x40] sm:$0xff]  ;;  %v118_v44 = vld [vmem:[#allocation8 + $0x48] sm:$0xff]  ;;  %p960_p13 = scmp.lt.s32.totalorder %s749_s28, %s749_s28 }
  0x5f   :  { %v105_v24 = vmul.f32 %v101_v18, %v93_v5  ;;  %v678_v25 = vsel %vm661_vm0, %v676_v19, 0.0  ;;  %v137_v32 = vld [vmem:[#allocation10 + $0x40] sm:$0xff]  ;;  %v138_v45 = vld [vmem:[#allocation10 + $0x48] sm:$0xff]  ;;  %v127_v55 = vld [vmem:[#allocation8 + $0x90] sm:$0xff]  ;;  %s955_s29 = scalar_lea.vmem %s749_s28, 640 }
  0x60   :  { %v106_v28 = vmul.f32 %v102_v20, %v94_v6  ;;  %v107_v29 = vmul.f32 %v103_v21, %v95_v10  ;;  %v108_v30 = vmul.f32 %v104_v22, %v96_v11  ;;  %v679_v31 = vadd.f32 %v678_v25, %v677_v23  ;;  %v147_v56 = vld [vmem:[#allocation10 + $0x90] sm:$0xff]  ;;  %p956_p12 = scmp.ne.s32.totalorder %s749_s28, %s955_s29  ;;  %p961_p0 = scmp.lt.s32.totalorder %s955_s29, %s955_s29 }
  0x61   :  { %v728_v26 = vld [vmem:[#allocation11 + $0x8] sm:$0xff]  ;;  %v657_v33 = vmul.f32 %v105_v24, %v89_v1  ;;  %v680_v34 = vsel %vm661_vm0, %v105_v24, 0.0  ;;  %v1131_v35 = vsub.f32 %v137_v32, %v117_v27  ;;  %v724_v53 = vld [vmem:[#allocation11] sm:$0xff]  ;;  %v1142_v57 = vsub.f32 %v138_v45, %v118_v44 }
  0x62   :  { %v658_v36 = vmul.f32 %v106_v28, %v90_v2  ;;  %v659_v37 = vmul.f32 %v107_v29, %v91_v3  ;;  %v660_v38 = vmul.f32 %v108_v30, %v92_v4  ;;  %v729_v39 = vadd.f32 %v728_v26, %v679_v31  ;;  %v732_v61 = vld [vmem:[#allocation11 + $0x10] sm:$0xff]  ;;  %p962_p1 = por %p961_p0, %p960_p13 }
  0x63   :  { %1609 = vst [vmem:[#allocation16_spill] sm:$0xff] %v1131_v35  ;;  %v662_v40 = vsel %vm661_vm0, %v657_v33, 0.0  ;;  %v681_v41 = vsel %vm661_vm0, %v107_v29, 0.0  ;;  %v683_v42 = vsel %vm661_vm0, %v106_v28, 0.0  ;;  %v684_v43 = vsel %vm661_vm0, %v108_v30, 0.0  ;;  %1610 = vst [vmem:[#allocation17_spill] sm:$0xff] %v1142_v57 }
  0x64   :  { %v663_v46 = vsel %vm661_vm0, %v659_v37, 0.0  ;;  %v665_v47 = vsel %vm661_vm0, %v658_v36, 0.0  ;;  %v666_v48 = vsel %vm661_vm0, %v660_v38, 0.0  ;;  %730 = vst.msk [vmem:[#allocation11 + $0x8] sm:$0xff] %vm661_vm0, %v729_v39  ;;  %v682_v49 = vadd.f32 %v681_v41, %v680_v34  ;;  %p963_p2 = pnand %p962_p1, %p956_p12 }
  0x65   :  { %v664_v50 = vadd.f32 %v663_v46, %v662_v40  ;;  %v667_v51 = vadd.f32 %v666_v48, %v665_v47  ;;  %v685_v52 = vadd.f32 %v684_v43, %v683_v42  ;;  %v241_v62 = vand.u32 2147483647, %v1131_v35 }
  0x66   :  { %v686_v54 = vsel %vm661_vm0, %v682_v49, 0.0  ;;  %v244_v1 = vand.u32 2139095040, %v1131_v35  ;;  %v1149_v2 = vsub.f32 %v147_v56, %v127_v55  ;;  %v344_v3 = vand.u32 2147483647, %v1142_v57 }
  0x67   :  { %v668_v58 = vsel %vm661_vm0, %v664_v50, 0.0  ;;  %v669_v59 = vsel %vm661_vm0, %v667_v51, 0.0  ;;  %v687_v60 = vsel %vm661_vm0, %v685_v52, 0.0  ;;  %v347_v7 = vand.u32 2139095040, %v1142_v57 }
  0x68   :  { %v670_v63 = vadd.f32 %v669_v59, %v668_v58  ;;  %v688_v0 = vadd.f32 %v687_v60, %v686_v54  ;;  %v245_v6 = vshrl.u32 %v244_v1, 23  ;;  %v248_v8 = vand.u32 8388607, %v241_v62 }
  0x69   :  { %v351_v9 = vand.u32 8388607, %v344_v3  ;;  %v348_v11 = vshrl.u32 %v347_v7, 23  ;;  %v450_v12 = vand.u32 2139095040, %v1149_v2  ;;  %v993_v27 = vmov 683565275  }
  0x6a   :  { %v725_v4 = vadd.f32 %v724_v53, %v670_v63  ;;  %v733_v5 = vadd.f32 %v732_v61, %v688_v0  ;;  %v762_v10 = vadd.s32 4294967169, %v245_v6  ;;  %v249_v15 = vor.u32 8388608, %v248_v8 }
  0x6b   :  { %v766_v14 = vadd.s32 4294967169, %v348_v11  ;;  %v352_v16 = vor.u32 8388608, %v351_v9  ;;  %v451_v17 = vshrl.u32 %v450_v12, 23  ;;  %v994_v29 = vmov 2475754826  }
  0x6c   :  { %726 = vst.msk [vmem:[#allocation11] sm:$0xff] %vm661_vm0, %v725_v4  ;;  %734 = vst.msk [vmem:[#allocation11 + $0x10] sm:$0xff] %vm661_vm0, %v733_v5  ;;  %v251_v13 = vadd.s32 1, %v762_v10  ;;  %v1160_v23 = vshll.u32 %v249_v15, 8  ;;  %v995_v31 = vmov 2131351028  }
  0x6d   :  { %v354_v18 = vadd.s32 1, %v766_v14  ;;  %v770_v20 = vadd.s32 4294967169, %v451_v17  ;;  %v1162_v25 = vshll.u32 %v352_v16, 8  ;;  %v996_v33 = vmov 2102212464  }
  0x6e   :  { %vm252_vm1 = vcmp.gt.s32.totalorder %v251_v13, 0  ;;  %v997_v36 = vmov 920167782   ;;  %v998_v44 = vmov 1326507024  }
  0x6f   :  { %v253_v19 = vsel %vm252_vm1, %v251_v13, 0  ;;  %vm355_vm2 = vcmp.gt.s32.totalorder %v354_v18, 0  ;;  %v1169_v38 = vadd.s32 1, %v770_v20 }
  0x70   :  { %v254_v21 = vshrl.u32 %v253_v19, 5  ;;  %v255_v22 = vand.u32 31, %v253_v19  ;;  %v356_v24 = vsel %vm355_vm2, %v354_v18, 0 }
  0x71   :  { %v357_v51 = vshrl.u32 %v356_v24, 5  ;;  %v358_v52 = vand.u32 31, %v356_v24  ;;  %vm458_vm9 = vcmp.gt.s32.totalorder %v1169_v38, 0 }
  0x72   :  { %v256_v26 = vsub.s32 32, %v255_v22  ;;  %v258_v28 = vshll.u32 %v993_v27, %v255_v22  ;;  %v261_v30 = vshll.u32 %v994_v29, %v255_v22  ;;  %v264_v32 = vshll.u32 %v995_v31, %v255_v22 }
  0x73   :  { %v267_v34 = vshll.u32 %v996_v33, %v255_v22  ;;  %v270_v37 = vshll.u32 %v997_v36, %v255_v22  ;;  %vm273_vm3 = vcmp.lt.s32.totalorder %v254_v21, 1  ;;  %vm274_vm4 = vcmp.lt.s32.totalorder %v254_v21, 2 }
  0x74   :  { %v257_v39 = vshrl.u32 %v993_v27, %v256_v26  ;;  %v259_v40 = vshrl.u32 %v994_v29, %v256_v26  ;;  %v262_v41 = vshrl.u32 %v995_v31, %v256_v26  ;;  %v265_v42 = vshrl.u32 %v996_v33, %v256_v26 }
  0x75   :  { %v268_v43 = vshrl.u32 %v997_v36, %v256_v26  ;;  %v271_v45 = vshrl.u32 %v998_v44, %v256_v26  ;;  %vm275_vm5 = vcmp.lt.s32.totalorder %v254_v21, 3  ;;  %vm276_vm6 = vcmp.lt.s32.totalorder %v254_v21, 4 }
  0x76   :  { %v260_v46 = vor.u32 %v259_v40, %v258_v28  ;;  %v263_v47 = vor.u32 %v262_v41, %v261_v30  ;;  %v266_v48 = vor.u32 %v265_v42, %v264_v32  ;;  %v359_v61 = vsub.s32 32, %v358_v52 }
  0x77   :  { %v269_v49 = vor.u32 %v268_v43, %v267_v34  ;;  %v272_v50 = vor.u32 %v271_v45, %v270_v37  ;;  %v361_v4 = vshll.u32 %v993_v27, %v358_v52  ;;  %v364_v14 = vshll.u32 %v994_v29, %v358_v52 }
  0x78   :  { %v277_v53 = vsel %vm273_vm3, %v257_v39, %v260_v46  ;;  %v278_v54 = vsel %vm276_vm6, %v266_v48, 2102212464  ;;  %v281_v55 = vsel %vm273_vm3, %v260_v46, %v263_v47  ;;  %v285_v56 = vsel %vm273_vm3, %v263_v47, %v266_v48 }
  0x79   :  { %v279_v58 = vsel %vm275_vm5, %v263_v47, %v278_v54  ;;  %v282_v59 = vsel %vm276_vm6, %v269_v49, 920167782  ;;  %v286_v60 = vsel %vm276_vm6, %v272_v50, 1326507024  ;;  %v360_v8 = vshrl.u32 %v993_v27, %v359_v61 }
  0x7a   :  { %v280_v63 = vsel %vm274_vm4, %v277_v53, %v279_v58  ;;  %v283_v0 = vsel %vm275_vm5, %v266_v48, %v282_v59  ;;  %v287_v1 = vsel %vm275_vm5, %v269_v49, %v286_v60  ;;  %v362_v13 = vshrl.u32 %v994_v29, %v359_v61  ;;  %v148_v53 = vld [vmem:[#allocation10 + $0x98] sm:$0xff] }
  0x7b   :  { %v284_v5 = vsel %vm274_vm4, %v281_v55, %v283_v0  ;;  %v288_v6 = vsel %vm274_vm4, %v285_v56, %v287_v1  ;;  %v296_v7 = vmul.u32 %v1160_v23, %v280_v63  ;;  %v365_v15 = vshrl.u32 %v995_v31, %v359_v61 }
  0x7c   :  { %v1190_v9 = vmul.u32.u64.low %v1160_v23, %v288_v6  ;;  %v1191_v10 = vmul.u32.u64.high %v1160_v23, %v288_v6, %v1190_v9  ;;  %v1194_v11 = vmul.u32.u64.low %v1160_v23, %v284_v5  ;;  %v1195_v12 = vmul.u32.u64.high %v1160_v23, %v284_v5, %v1194_v11 }
  0x7d   :  { %v367_v16 = vshll.u32 %v995_v31, %v358_v52  ;;  %v368_v17 = vshrl.u32 %v996_v33, %v359_v61  ;;  %v370_v18 = vshll.u32 %v996_v33, %v358_v52  ;;  %v371_v19 = vshrl.u32 %v997_v36, %v359_v61 }
  0x7e   :  { %v373_v20 = vshll.u32 %v997_v36, %v358_v52  ;;  %v363_v21 = vor.u32 %v362_v13, %v361_v4  ;;  %v366_v22 = vor.u32 %v365_v15, %v364_v14  ;;  %v374_v23 = vshrl.u32 %v998_v44, %v359_v61  ;;  %v128_v52 = vld [vmem:[#allocation8 + $0x98] sm:$0xff] }
  0x7f   :  { %vm376_vm7 = vcmp.lt.s32.totalorder %v357_v51, 1  ;;  %vm298_vm8 = vc.u32 %v1191_v10, %v1194_v11  ;;  %v299_v24 = vadd.s32 1, %v1195_v12  ;;  %v369_v26 = vor.u32 %v368_v17, %v367_v16 }
  0x80   :  { %v372_v28 = vor.u32 %v371_v19, %v370_v18  ;;  %v375_v30 = vor.u32 %v374_v23, %v373_v20  ;;  %vm377_vm10 = vcmp.lt.s32.totalorder %v357_v51, 2  ;;  %vm378_vm11 = vcmp.lt.s32.totalorder %v357_v51, 3 }
  0x81   :  { %v300_v32 = vsel %vm298_vm8, %v299_v24, %v1195_v12  ;;  %vm379_vm12 = vcmp.lt.s32.totalorder %v357_v51, 4  ;;  %v380_v34 = vsel %vm376_vm7, %v360_v8, %v363_v21  ;;  %v384_v37 = vsel %vm376_vm7, %v363_v21, %v366_v22 }
  0x82   :  { %v301_v39 = vadd.s32 %v300_v32, %v296_v7  ;;  %v381_v40 = vsel %vm379_vm12, %v369_v26, 2102212464  ;;  %v385_v41 = vsel %vm379_vm12, %v372_v28, 920167782  ;;  %v388_v42 = vsel %vm376_vm7, %v366_v22, %v369_v26 }
  0x83   :  { %v382_v43 = vsel %vm378_vm11, %v366_v22, %v381_v40  ;;  %v386_v45 = vsel %vm378_vm11, %v369_v26, %v385_v41  ;;  %v389_v46 = vsel %vm379_vm12, %v375_v30, 1326507024  ;;  %v459_v50 = vsel %vm458_vm9, %v1169_v38, 0 }
  0x84   :  { %v302_v47 = vadd.s32 536870912, %v301_v39  ;;  %v387_v48 = vsel %vm377_vm10, %v384_v37, %v386_v45  ;;  %v390_v49 = vsel %vm378_vm11, %v372_v28, %v389_v46  ;;  %v383_v54 = vsel %vm377_vm10, %v380_v34, %v382_v43 }
  0x85   :  { %v391_v55 = vsel %vm377_vm10, %v388_v42, %v390_v49  ;;  %v1222_v56 = vmul.u32.u64.low %v1162_v25, %v387_v48  ;;  %v1223_v58 = vmul.u32.u64.high %v1162_v25, %v387_v48, %v1222_v56  ;;  %v447_v63 = vand.u32 2147483647, %v1149_v2 }
  0x86   :  { %v1226_v59 = vshrl.u32 %v302_v47, 30  ;;  %v1229_v60 = vmul.u32.u64.low %v1162_v25, %v391_v55  ;;  %v1230_v61 = vmul.u32.u64.high %v1162_v25, %v391_v55, %v1229_v60  ;;  %v461_v38 = vand.u32 31, %v459_v50 }
  0x87   :  { %v1233_v0 = vsub.f32 %v148_v53, %v128_v52  ;;  %v399_v51 = vmul.u32 %v1162_v25, %v383_v54  ;;  %v402_v4 = vadd.s32 1, %v1223_v58  ;;  %v454_v8 = vand.u32 8388607, %v447_v63 }
  0x88   :  { %v304_v1 = vshll.u32 %v1226_v59, 30  ;;  %v462_v5 = vsub.s32 32, %v461_v38  ;;  %vm401_vm13 = vc.u32 %v1230_v61, %v1222_v56  ;;  %v460_v13 = vshrl.u32 %v459_v50, 5 }
  0x89   :  { %1611 = vst [vmem:[#allocation18_spill] sm:$0xff] %v1233_v0  ;;  %v403_v7 = vsel %vm401_vm13, %v402_v4, %v1223_v58  ;;  %v553_v14 = vand.u32 2139095040, %v1233_v0  ;;  %v464_v25 = vshll.u32 %v993_v27, %v461_v38  ;;  %v467_v16 = vshll.u32 %v994_v29, %v461_v38 }
  0x8a   :  { %v1238_v6 = vsub.s32 %v301_v39, %v304_v1  ;;  %v404_v12 = vadd.s32 %v403_v7, %v399_v51  ;;  %v465_v15 = vshrl.u32 %v994_v29, %v462_v5  ;;  %v473_v17 = vshll.u32 %v996_v33, %v461_v38 }
  0x8b   :  { %v468_v19 = vshrl.u32 %v995_v31, %v462_v5  ;;  %v470_v20 = vshll.u32 %v995_v31, %v461_v38  ;;  %v471_v21 = vshrl.u32 %v996_v33, %v462_v5  ;;  %v455_v23 = vor.u32 8388608, %v454_v8 }
  0x8c   :  { %v307_v9 = vsub.s32 0, %v1238_v6  ;;  %v405_v22 = vadd.s32 536870912, %v404_v12  ;;  %v474_v24 = vshrl.u32 %v997_v36, %v462_v5  ;;  %v476_v28 = vshll.u32 %v997_v36, %v461_v38 }
  0x8d   :  { %v477_v30 = vshrl.u32 %v998_v44, %v462_v5  ;;  %v554_v32 = vshrl.u32 %v553_v14, 23  ;;  %vm479_vm14 = vcmp.lt.s32.totalorder %v460_v13, 1  ;;  %vm482_vm15 = vcmp.lt.s32.totalorder %v460_v13, 4 }
  0x8e   :  { %v763_v18 = vmin.u32 %v307_v9, %v1238_v6  ;;  %v1258_v34 = vshrl.u32 %v405_v22, 30  ;;  %v475_v37 = vor.u32 %v474_v24, %v473_v17  ;;  %v466_v40 = vor.u32 %v465_v15, %v464_v25 }
  0x8f   :  { %v469_v41 = vor.u32 %v468_v19, %v467_v16  ;;  %v472_v42 = vor.u32 %v471_v21, %v470_v20  ;;  %v478_v45 = vor.u32 %v477_v30, %v476_v28  ;;  %vm481_vm1 = vcmp.lt.s32.totalorder %v460_v13, 3 }
  0x90   :  { %v309_v26 = vclz %v763_v18  ;;  %v407_v43 = vshll.u32 %v1258_v34, 30  ;;  %v488_v46 = vsel %vm482_vm15, %v475_v37, 920167782  ;;  %v297_v47 = vadd.s32 %v1194_v11, %v1191_v10 }
  0x91   :  { %v463_v48 = vshrl.u32 %v993_v27, %v462_v5  ;;  %v774_v49 = vadd.s32 4294967169, %v554_v32  ;;  %vm480_vm3 = vcmp.lt.s32.totalorder %v460_v13, 2  ;;  %v484_v53 = vsel %vm482_vm15, %v472_v42, 2102212464 }
  0x92   :  { %v764_v39 = vadd.s32 4294967294, %v309_v26  ;;  %v408_v52 = vsub.s32 %v404_v12, %v407_v43  ;;  %v487_v58 = vsel %vm479_vm14, %v466_v40, %v469_v41  ;;  %v489_v60 = vsel %vm481_vm1, %v472_v42, %v488_v46 }
  0x93   :  { %v491_v1 = vsel %vm479_vm14, %v469_v41, %v472_v42  ;;  %v492_v10 = vsel %vm482_vm15, %v478_v45, 1326507024  ;;  %v495_v11 = vshll.u32 %v455_v23, 8  ;;  %v483_v4 = vsel %vm479_vm14, %v463_v48, %v466_v40 }
  0x94   :  { %vm765_vm2 = vcmp.lt.s32.totalorder %v764_v39, 0  ;;  %v410_v38 = vsub.s32 0, %v408_v52  ;;  %v493_v5 = vsel %vm481_vm1, %v475_v37, %v492_v10  ;;  %v560_v7 = vadd.s32 1, %v774_v49 }
  0x95   :  { %v312_v50 = vsel %vm765_vm2, 0, %v764_v39  ;;  %v485_v12 = vsel %vm481_vm1, %v469_v41, %v484_v53  ;;  %v490_v14 = vsel %vm480_vm3, %v487_v58, %v489_v60  ;;  %v494_v16 = vsel %vm480_vm3, %v491_v1, %v493_v5 }
  0x96   :  { %v313_v54 = vsub.s32 32, %v312_v50  ;;  %v317_v55 = vsub.s32 4294967266, %v312_v50  ;;  %v314_v8 = vshll.u32 %v1238_v6, %v312_v50  ;;  %v767_v9 = vmin.u32 %v410_v38, %v408_v52 }
  0x97   :  { %vm561_vm4 = vcmp.gt.s32.totalorder %v560_v7, 0  ;;  %v1276_v18 = vmul.u32.u64.low %v495_v11, %v494_v16  ;;  %v1277_v19 = vmul.u32.u64.high %v495_v11, %v494_v16, %v1276_v18  ;;  %v486_v21 = vsel %vm480_vm3, %v483_v4, %v485_v12 }
  0x98   :  { %v318_v51 = vadd.s32 127, %v317_v55  ;;  %v315_v25 = vshrl.u32 %v297_v47, %v313_v54  ;;  %v412_v17 = vclz %v767_v9  ;;  %v562_v20 = vsel %vm561_vm4, %v560_v7, 0 }
  0x99   :  { %v1280_v22 = vmul.u32.u64.low %v495_v11, %v490_v14  ;;  %v1281_v23 = vmul.u32.u64.high %v495_v11, %v490_v14, %v1280_v22  ;;  %v1599_v24 = vand.u32 2147483647, %v1233_v0  ;;  %v564_v26 = vand.u32 31, %v562_v20 }
  0x9a   :  { %v319_v15 = vshll.u32 %v318_v51, 23  ;;  %v768_v6 = vadd.s32 4294967294, %v412_v17  ;;  %v316_v28 = vor.u32 %v315_v25, %v314_v8  ;;  %v400_v32 = vadd.s32 %v1222_v56, %v1230_v61 }
  0x9b   :  { %v502_v37 = vmul.u32 %v495_v11, %v486_v21  ;;  %vm504_vm6 = vc.u32 %v1277_v19, %v1280_v22  ;;  %v565_v13 = vsub.s32 32, %v564_v26  ;;  %v505_v40 = vadd.s32 1, %v1281_v23 }
  0x9c   :  { %v320_v30 = vor.u32 4788187, %v319_v15  ;;  %vm769_vm5 = vcmp.lt.s32.totalorder %v768_v6, 0  ;;  %v557_v45 = vand.u32 8388607, %v1599_v24  ;;  %v323_v47 = vcvt.s32.f32 %v316_v28  ;;  %v146_v24 = vld [vmem:[#allocation10 + $0x88] sm:$0xff] }
  0x9d   :  { %v415_v39 = vsel %vm769_vm5, 0, %v768_v6  ;;  %v506_v48 = vsel %vm504_vm6, %v505_v40, %v1281_v23  ;;  %v567_v56 = vshll.u32 %v993_v27, %v564_v26  ;;  %v568_v53 = vshrl.u32 %v994_v29, %v565_v13 }
  0x9e   :  { %v416_v41 = vsub.s32 32, %v415_v39  ;;  %v417_v42 = vshll.u32 %v408_v52, %v415_v39  ;;  %v420_v43 = vsub.s32 4294967266, %v415_v39  ;;  %v321_v46 = vand.u32 2147483647, %v320_v30 }
  0x9f   :  { %v507_v50 = vadd.s32 %v506_v48, %v502_v37  ;;  %v563_v54 = vshrl.u32 %v562_v20, 5  ;;  %v570_v55 = vshll.u32 %v994_v29, %v564_v26  ;;  %v571_v52 = vshrl.u32 %v995_v31, %v565_v13 }
  0xa0   :  { %v418_v61 = vshrl.u32 %v400_v32, %v416_v41  ;;  %v421_v49 = vadd.s32 127, %v420_v43  ;;  %v573_v58 = vshll.u32 %v995_v31, %v564_v26  ;;  %v574_v10 = vshrl.u32 %v996_v33, %v565_v13 }
  0xa1   :  { %v508_v1 = vadd.s32 536870912, %v507_v50  ;;  %v558_v11 = vor.u32 8388608, %v557_v45  ;;  %v576_v51 = vshll.u32 %v996_v33, %v564_v26  ;;  %v324_v4 = vmul.f32 %v323_v47, %v321_v46 }
  0xa2   :  { %v419_v60 = vor.u32 %v418_v61, %v417_v42  ;;  %v422_v38 = vshll.u32 %v421_v49, 23  ;;  %v569_v8 = vor.u32 %v568_v53, %v567_v56  ;;  %v572_v9 = vor.u32 %v571_v52, %v570_v55  ;;  %v1342_v55 = vld [vmem:[#allocation8] sm:$0xff] }
  0xa3   :  { %v1300_v7 = vshrl.u32 %v508_v1, 30  ;;  %v577_v29 = vshrl.u32 %v997_v36, %v565_v13  ;;  %v579_v12 = vshll.u32 %v997_v36, %v564_v26  ;;  %v580_v31 = vshrl.u32 %v998_v44, %v565_v13  ;;  %v1359_v1 = vld [vmem:[#allocation8 + $0x18] sm:$0xff] }
  0xa4   :  { %v423_v5 = vor.u32 4788187, %v422_v38  ;;  %v426_v14 = vcvt.s32.f32 %v419_v60  ;;  %v575_v15 = vor.u32 %v574_v10, %v573_v58  ;;  %vm582_vm7 = vcmp.lt.s32.totalorder %v563_v54, 1  ;;  %v1355_v60 = vld [vmem:[#allocation8 + $0x8] sm:$0xff]  ;;  %v1357_v38 = vld [vmem:[#allocation8 + $0x10] sm:$0xff] }
  0xa5   :  { %v510_v25 = vshll.u32 %v1300_v7, 30  ;;  %v578_v17 = vor.u32 %v577_v29, %v576_v51  ;;  %v581_v33 = vor.u32 %v580_v31, %v579_v12  ;;  %vm585_vm8 = vcmp.lt.s32.totalorder %v563_v54, 4  ;;  %v1374_v29 = vld [vmem:[#allocation8 + $0x28] sm:$0xff]  ;;  %v1376_v12 = vld [vmem:[#allocation8 + $0x58] sm:$0xff] }
  0xa6   :  { %v424_v16 = vand.u32 2147483647, %v423_v5  ;;  %vm584_vm9 = vcmp.lt.s32.totalorder %v563_v54, 3  ;;  %v325_v20 = vxor.u32 2147483648, %v324_v4  ;;  %v566_v21 = vshrl.u32 %v993_v27, %v565_v13  ;;  %v1378_v31 = vld [vmem:[#allocation8 + $0x68] sm:$0xff] }
  0xa7   :  { %v1306_v18 = vsub.s32 %v507_v50, %v510_v25  ;;  %v591_v23 = vsel %vm585_vm8, %v578_v17, 920167782  ;;  %v1309_v6 = vshll.u32 %v558_v11, 8  ;;  %vm583_vm10 = vcmp.lt.s32.totalorder %v563_v54, 2  ;;  %v1385_v25 = vld [vmem:[#allocation8 + $0x30] sm:$0xff] }
  0xa8   :  { %v587_v44 = vsel %vm585_vm8, %v575_v15, 2102212464  ;;  %v590_v26 = vsel %vm582_vm7, %v569_v8, %v572_v9  ;;  %v427_v28 = vmul.f32 %v426_v14, %v424_v16  ;;  %v592_v30 = vsel %vm584_vm9, %v575_v15, %v591_v23  ;;  %v1389_v16 = vld [vmem:[#allocation8 + $0x70] sm:$0xff]  ;;  %v1401_v23 = vld [vmem:[#allocation8 + $0x80] sm:$0xff] }
  0xa9   :  { %v513_v36 = vsub.s32 0, %v1306_v18  ;;  %v594_v32 = vsel %vm582_vm7, %v572_v9, %v575_v15  ;;  %v595_v37 = vsel %vm585_vm8, %v581_v33, 1326507024  ;;  %vm243_vm11 = vcmp.lt.s32.totalorder %v1131_v35, 0  ;;  %v1387_v15 = vld [vmem:[#allocation8 + $0x38] sm:$0xff] }
  0xaa   :  { %v586_v27 = vsel %vm582_vm7, %v566_v21, %v569_v8  ;;  %v588_v13 = vsel %vm584_vm9, %v572_v9, %v587_v44  ;;  %v593_v40 = vsel %vm583_vm10, %v590_v26, %v592_v30  ;;  %v596_v41 = vsel %vm584_vm9, %v578_v17, %v595_v37  ;;  %v1399_v21 = vld [vmem:[#allocation8 + $0x78] sm:$0xff]  ;;  %v1625_v30 = vld [vmem:[#allocation16_spill] sm:$0xff] }
  0xab   :  { %v771_v39 = vmin.u32 %v513_v36, %v1306_v18  ;;  %vm1323_vm12 = vcmp.le.f32.partialorder %v241_v62, 0.7853982  ;;  %vm346_vm13 = vcmp.lt.s32.totalorder %v1142_v57, 0  ;;  %v597_v45 = vsel %vm583_vm10, %v594_v32, %v596_v41  ;;  %v1425_v41 = vld [vmem:[#allocation10 + $0x8] sm:$0xff] }
  0xac   :  { %v326_v46 = vsel %vm243_vm11, %v325_v20, %v324_v4  ;;  %v428_v47 = vxor.u32 2147483648, %v427_v28  ;;  %v1332_v48 = vmul.u32.u64.low %v1309_v6, %v597_v45  ;;  %v1333_v56 = vmul.u32.u64.high %v1309_v6, %v597_v45, %v1332_v48  ;;  %v1368_v4 = vld [vmem:[#allocation8 + $0x50] sm:$0xff] }
  0xad   :  { %v515_v43 = vclz %v771_v39  ;;  %v589_v49 = vsel %vm583_vm10, %v586_v27, %v588_v13  ;;  %v1337_v62 = vmul.u32.u64.low %v1309_v6, %v593_v40  ;;  %v1338_v50 = vmul.u32.u64.high %v1309_v6, %v593_v40, %v1337_v62  ;;  %v1419_v39 = vld [vmem:[#allocation10] sm:$0xff] }
  0xae   :  { %v327_v53 = vsub.s32 4, %v1226_v59  ;;  %v329_v52 = vsel %vm1323_vm12, %v1131_v35, %v326_v46  ;;  %vm1349_vm14 = vcmp.le.f32.partialorder %v344_v3, 0.7853982  ;;  %v1614_v58 = vmov 0  ;;  %v1366_v3 = vld [vmem:[#allocation8 + $0x20] sm:$0xff] }
  0xaf   :  { %v772_v61 = vadd.s32 4294967294, %v515_v43  ;;  %v1615_v58 = vsel %vm1349_vm14, 4294967295, %v1614_v58  ;;  %v503_v54 = vadd.s32 %v1280_v22, %v1277_v19  ;;  %v429_v10 = vsel %vm346_vm13, %v428_v47, %v427_v28  ;;  %v1370_v19 = vld [vmem:[#allocation8 + $0x60] sm:$0xff]  ;;  %v1427_v43 = vld [vmem:[#allocation10 + $0x10] sm:$0xff] }
  0xb0   :  { %1616 = vst [vmem:[#allocation19_spill] sm:$0xff] %v1615_v58  ;;  %v605_v51 = vmul.u32 %v1309_v6, %v589_v49  ;;  %vm607_vm1 = vc.u32 %v1333_v56, %v1337_v62  ;;  %v608_v9 = vadd.s32 1, %v1338_v50  ;;  %v1383_v14 = vsel %vm243_vm11, %v327_v53, %v1226_v59  ;;  %v1403_v6 = vld [vmem:[#allocation8 + $0x88] sm:$0xff]  ;;  %v133_v49 = vld [vmem:[#allocation10 + $0x20] sm:$0xff]  ;;  %v135_v53 = vld [vmem:[#allocation10 + $0x30] sm:$0xff] }
  0xb1   :  { %vm773_vm15 = vcmp.lt.s32.totalorder %v772_v61, 0  ;;  %v149_v17 = vadd.f32 %v1357_v38, %v1342_v55  ;;  %v150_v33 = vadd.f32 %v1359_v1, %v1355_v60  ;;  %v151_v36 = vadd.f32 %v1370_v19, %v1368_v4 }
  0xb2   :  { %v518_v11 = vsel %vm773_vm15, 0, %v772_v61  ;;  %v609_v59 = vsel %vm607_vm1, %v608_v9, %v1338_v50  ;;  %809 = vcosq.f32 %v329_v52  ;;  %v432_v44 = vsel %vm1349_vm14, %v1142_v57, %v429_v10  ;;  %v134_v50 = vld [vmem:[#allocation10 + $0x28] sm:$0xff] }
  0xb3   :  { %v519_v22 = vsub.s32 32, %v518_v11  ;;  %v520_v5 = vshll.u32 %v1306_v18, %v518_v11  ;;  %v523_v8 = vsub.s32 4294967266, %v518_v11  ;;  %vm449_vm2 = vcmp.lt.s32.totalorder %v1149_v2, 0 }
  0xb4   :  { %v610_v26 = vadd.s32 %v609_v59, %v605_v51  ;;  %v152_v28 = vadd.f32 %v1378_v31, %v1376_v12  ;;  %vm1415_vm3 = vcmp.le.f32.partialorder %v447_v63, 0.7853982  ;;  %v153_v27 = vadd.f32 %v1385_v25, %v1366_v3  ;;  %v1429_v63 = vld [vmem:[#allocation10 + $0x18] sm:$0xff]  ;;  %v145_v59 = vld [vmem:[#allocation10 + $0x80] sm:$0xff] }
  0xb5   :  { %v521_v18 = vshrl.u32 %v503_v54, %v519_v22  ;;  %v524_v20 = vadd.s32 127, %v523_v8  ;;  %v154_v13 = vadd.f32 %v1387_v15, %v1374_v29  ;;  %811 = vsinq.f32 %v329_v52  ;;  %v1438_v52 = vld [vmem:[#allocation10 + $0x50] sm:$0xff]  ;;  %v1444_v51 = vld [vmem:[#allocation10 + $0x58] sm:$0xff]  ;;  %v1446_v22 = vld [vmem:[#allocation10 + $0x60] sm:$0xff] }
  0xb6   :  { %v611_v40 = vadd.s32 536870912, %v610_v26  ;;  %v155_v45 = vadd.f32 %v1401_v23, %v1389_v16  ;;  %v156_v46 = vadd.f32 %v1403_v6, %v1399_v21  ;;  %813 = vcosq.f32 %v432_v44 }
  0xb7   :  { %v522_v32 = vor.u32 %v521_v18, %v520_v5  ;;  %v525_v37 = vshll.u32 %v524_v20, 23  ;;  %815 = vsinq.f32 %v432_v44  ;;  %v1448_v5 = vld [vmem:[#allocation10 + $0x68] sm:$0xff]  ;;  %v1452_v9 = vadd.s32 %v1337_v62, %v1333_v56  ;;  %v136_v18 = vld [vmem:[#allocation10 + $0x38] sm:$0xff]  ;;  %v143_v20 = vld [vmem:[#allocation10 + $0x70] sm:$0xff] }
  0xb8   :  { %v1442_v11 = vshrl.u32 %v611_v40, 30  ;;  %v158_v44 = vmul.f32 %v154_v13, %v150_v33  ;;  %v144_v40 = vld [vmem:[#allocation10 + $0x78] sm:$0xff]  ;;  %v159_v54 = vmul.f32 %v155_v45, %v151_v36  ;;  %v160_v47 = vmul.f32 %v156_v46, %v152_v28 }
  0xb9   :  { %v526_v48 = vor.u32 4788187, %v525_v37  ;;  %v529_v61 = vcvt.s32.f32 %v522_v32  ;;  %v157_v32 = vmul.f32 %v153_v27, %v149_v17  ;;  %v161_v10 = vadd.f32 %v1427_v43, %v1419_v39 }
  0xba   :  { %1619 = vst [vmem:[#allocation20_spill] sm:$0xff] %v1442_v11  ;;  %v613_v37 = vshll.u32 %v1442_v11, 30  ;;  %v163_v56 = vadd.f32 %v1446_v22, %v1438_v52  ;;  %v164_v62 = vadd.f32 %v1448_v5, %v1444_v51  ;;  %v165_v33 = vadd.f32 %v135_v53, %v133_v49 }
  0xbb   :  { %v527_v8 = vand.u32 2147483647, %v526_v48  ;;  %v162_v48 = vadd.f32 %v1429_v63, %v1425_v41  ;;  %v166_v27 = vadd.f32 %v136_v18, %v134_v50  ;;  %v167_v13 = vadd.f32 %v145_v59, %v143_v20 }
  0xbc   :  { %v1463_v17 = vsub.s32 %v610_v26, %v613_v37  ;;  %v168_v28 = vadd.f32 %v146_v24, %v144_v40  ;;  %v173_v45 = vmin.f32 %v1366_v3, %v133_v49  ;;  %v174_v46 = vmin.f32 %v1374_v29, %v134_v50 }
  0xbd   :  { %v530_v58 = vmul.f32 %v529_v61, %v527_v8  ;;  %v1467_v61 = vpop.eup %809  ;;  %v175_v11 = vmin.f32 %v1389_v16, %v143_v20  ;;  %v176_v35 = vmin.f32 %v1399_v21, %v144_v40  ;;  %v177_v26 = vmin.f32 %v1385_v25, %v135_v53 }
  0xbe   :  { %v616_v8 = vsub.s32 0, %v1463_v17  ;;  %v178_v0 = vmin.f32 %v1387_v15, %v136_v18  ;;  %v179_v57 = vmin.f32 %v1401_v23, %v145_v59  ;;  %v180_v3 = vmin.f32 %v1403_v6, %v146_v24 }
  0xbf   :  { %v531_v36 = vxor.u32 2147483648, %v530_v58  ;;  %v1478_v29 = vpop.eup %811  ;;  %v169_v21 = vmul.f32 %v165_v33, %v161_v10  ;;  %v170_v50 = vmul.f32 %v166_v27, %v162_v48  ;;  %v172_v53 = vmul.f32 %v168_v28, %v164_v62 }
  0xc0   :  { %v775_v16 = vmin.u32 %v616_v8, %v1463_v17  ;;  %v1484_v25 = vpop.eup %813  ;;  %v181_v15 = vadd.f32 %v177_v26, %v173_v45  ;;  %v182_v23 = vadd.f32 %v178_v0, %v174_v46  ;;  %v183_v6 = vadd.f32 %v179_v57, %v175_v11  ;;  %v1623_v26 = vld [vmem:[#allocation17_spill] sm:$0xff] }
  0xc1   :  { %v532_v37 = vsel %vm449_vm2, %v531_v36, %v530_v58  ;;  %v171_v58 = vmul.f32 %v167_v13, %v163_v56  ;;  %v1486_v18 = vpop.eup %815  ;;  %v184_v20 = vadd.f32 %v180_v3, %v176_v35  ;;  %v185_v59 = vmin.f32 %v1342_v55, %v1419_v39 }
  0xc2   :  { %v535_v49 = vsel %vm1415_vm3, %v1149_v2, %v532_v37  ;;  %v618_v24 = vclz %v775_v16  ;;  %v186_v10 = vmin.f32 %v1355_v60, %v1425_v41  ;;  %v187_v40 = vmin.f32 %v1368_v4, %v1438_v52 }
  0xc3   :  { %817 = vcosq.f32 %v535_v49  ;;  %v188_v56 = vmin.f32 %v1376_v12, %v1444_v51  ;;  %v189_v62 = vmin.f32 %v1357_v38, %v1427_v43  ;;  %v190_v57 = vmin.f32 %v1359_v1, %v1429_v63 }
  0xc4   :  { %819 = vsinq.f32 %v535_v49  ;;  %v776_v48 = vadd.s32 4294967294, %v618_v24  ;;  %v191_v35 = vmin.f32 %v1370_v19, %v1446_v22  ;;  %v192_v0 = vmin.f32 %v1378_v31, %v1448_v5 }
  0xc5   :  { %v201_v55 = vadd.f32 %v169_v21, %v157_v32  ;;  %v202_v60 = vadd.f32 %v170_v50, %v158_v44  ;;  %v193_v4 = vadd.f32 %v189_v62, %v185_v59  ;;  %v194_v39 = vadd.f32 %v190_v57, %v186_v10  ;;  %v1630_v62 = vld [vmem:[#allocation20_spill] sm:$0xff] }
  0xc6   :  { %vm777_vm4 = vcmp.lt.s32.totalorder %v776_v48, 0  ;;  %v203_v41 = vadd.f32 %v171_v58, %v159_v54  ;;  %v195_v12 = vadd.f32 %v191_v35, %v187_v40  ;;  %v196_v11 = vadd.f32 %v192_v0, %v188_v56  ;;  %v1624_v58 = vld [vmem:[#allocation18_spill] sm:$0xff] }
  0xc7   :  { %v621_v52 = vsel %vm777_vm4, 0, %v776_v48  ;;  %v204_v51 = vadd.f32 %v172_v53, %v160_v47  ;;  %v197_v63 = vmul.f32 %v193_v4, %v181_v15  ;;  %v1620_v19 = vsub.s32 4, %v1300_v7 }
  0xc8   :  { %v622_v38 = vsub.s32 32, %v621_v52  ;;  %v623_v43 = vshll.u32 %v1463_v17, %v621_v52  ;;  %v626_v1 = vsub.s32 4294967266, %v621_v52  ;;  %v198_v22 = vmul.f32 %v194_v39, %v182_v23 }
  0xc9   :  { %v534_v31 = vsel %vm449_vm2, %v1620_v19, %v1300_v7  ;;  %v199_v5 = vmul.f32 %v195_v12, %v183_v6  ;;  %v1510_v32 = vmul.f32 %v196_v11, %v184_v20  ;;  %v205_v33 = vsub.f32 %v201_v55, %v197_v63 }
  0xca   :  { %v624_v54 = vshrl.u32 %v1452_v9, %v622_v38  ;;  %v627_v44 = vadd.s32 127, %v626_v1  ;;  %v206_v27 = vsub.f32 %v202_v60, %v198_v22  ;;  %v1621_v28 = vsel %vm1323_vm12, 0, %v1383_v14 }
  0xcb   :  { %v207_v13 = vsub.f32 %v203_v41, %v199_v5  ;;  %v208_v17 = vsub.f32 %v204_v51, %v1510_v32  ;;  %v334_v45 = vand.u32 3, %v1621_v28  ;;  %v536_v7 = vsel %vm1415_vm3, 0, %v534_v31 }
  0xcc   :  { %v625_v46 = vor.u32 %v624_v54, %v623_v43  ;;  %v628_v8 = vshll.u32 %v627_v44, 23  ;;  %v1622_v9 = vsub.s32 4, %v1258_v34  ;;  %v213_v3 = vadd.f32 1.0, %v205_v33 }
  0xcd   :  { %v818_v47 = vpop.eup %817  ;;  %v214_v49 = vadd.f32 1.0, %v206_v27  ;;  %v215_v50 = vadd.f32 1.0, %v207_v13  ;;  %v540_v42 = vand.u32 3, %v536_v7  ;;  %vm552_vm5 = vcmp.lt.s32.totalorder %v1624_v58, 0 }
  0xce   :  { %v820_v36 = vpop.eup %819  ;;  %v431_v37 = vsel %vm346_vm13, %v1622_v9, %v1258_v34  ;;  %v629_v16 = vor.u32 4788187, %v628_v8  ;;  %v632_v21 = vcvt.s32.f32 %v625_v46  ;;  %v216_v14 = vadd.f32 1.0, %v208_v17 }
  0xcf   :  { %821 = vrcp.f32 %v213_v3  ;;  %vm333_vm6 = vweird.f32 %v1625_v30  ;;  %vm336_vm7 = vcmp.eq.s32.totalorder %v334_v45, 0  ;;  %v433_v15 = vsel %vm1349_vm14, 0, %v431_v37  ;;  %v842_v37 = vld [vmem:[#allocation2 + $0x10] sm:$0xff]  ;;  %v843_v30 = vld [vmem:[#allocation2 + $0x8] sm:$0xff] }
  0xd0   :  { %v630_v24 = vand.u32 2147483647, %v629_v16  ;;  %823 = vrcp.f32 %v214_v49  ;;  %v337_v34 = vxor.u32 2147483648, %v1478_v29  ;;  %vm339_vm8 = vcmp.eq.s32.totalorder %v334_v45, 2 }
  0xd1   :  { %v340_v23 = vxor.u32 2147483648, %v1467_v61  ;;  %825 = vrcp.f32 %v215_v50  ;;  %v543_v6 = vxor.u32 2147483648, %v820_v36  ;;  %v546_v20 = vxor.u32 2147483648, %v818_v47 }
  0xd2   :  { %v633_v59 = vmul.f32 %v632_v21, %v630_v24  ;;  %827 = vrcp.f32 %v216_v14  ;;  %v437_v10 = vand.u32 3, %v433_v15  ;;  %vm542_vm9 = vcmp.eq.s32.totalorder %v540_v42, 0 }
  0xd3   :  { %vm545_vm10 = vcmp.eq.s32.totalorder %v540_v42, 2  ;;  %v1627_v40 = vand.u32 2147483647, %v1624_v58  ;;  %vm335_vm12 = vcmp.lt.s32.totalorder %v334_v45, 2  ;;  %vm541_vm13 = vcmp.lt.s32.totalorder %v540_v42, 2  ;;  %v841_v45 = vld [vmem:[#allocation2] sm:$0xff] }
  0xd4   :  { %v634_v56 = vxor.u32 2147483648, %v633_v59  ;;  %v636_v57 = vsub.s32 4, %v1630_v62  ;;  %v338_v35 = vsel %vm336_vm7, %v1467_v61, %v337_v34  ;;  %v341_v0 = vsel %vm339_vm8, %v340_v23, %v1478_v29 }
  0xd5   :  { %vm1533_vm11 = vcmp.le.f32.partialorder %v1627_v40, 0.7853982  ;;  %v440_v55 = vxor.u32 2147483648, %v1486_v18  ;;  %v443_v60 = vxor.u32 2147483648, %v1484_v25  ;;  %v544_v4 = vsel %vm542_vm9, %v818_v47, %v543_v6 }
  0xd6   :  { %v547_v39 = vsel %vm545_vm10, %v546_v20, %v820_v36  ;;  %v635_v41 = vsel %vm552_vm5, %v634_v56, %v633_v59  ;;  %v209_v52 = vadd.f32 1.0, %v197_v63  ;;  %vm439_vm14 = vcmp.eq.s32.totalorder %v437_v10, 0 }
  0xd7   :  { %vm442_vm15 = vcmp.eq.s32.totalorder %v437_v10, 2  ;;  %v638_v12 = vsel %vm1533_vm11, %v1624_v58, %v635_v41  ;;  %v210_v61 = vadd.f32 1.0, %v198_v22  ;;  %v342_v11 = vsel %vm335_vm12, %v338_v35, %v341_v0 }
  0xd8   :  { %v637_v29 = vsel %vm552_vm5, %v636_v57, %v1630_v62  ;;  %829 = vcosq.f32 %v638_v12  ;;  %v211_v51 = vadd.f32 1.0, %v199_v5  ;;  %vm539_vm1 = vweird.f32 %v1149_v2  ;;  %v844_v62 = vld [vmem:[#allocation2 + $0x18] sm:$0xff] }
  0xd9   :  { %v822_v38 = vpop.eup %821  ;;  %v548_v43 = vsel %vm541_vm13, %v544_v4, %v547_v39  ;;  %831 = vsinq.f32 %v638_v12  ;;  %v212_v1 = vadd.f32 1.0, %v1510_v32  ;;  %vm438_vm2 = vcmp.lt.s32.totalorder %v437_v10, 2 }
  0xda   :  { %v824_v63 = vpop.eup %823  ;;  %v441_v19 = vsel %vm439_vm14, %v1484_v25, %v440_v55  ;;  %v444_v31 = vsel %vm442_vm15, %v443_v60, %v1486_v18  ;;  %v218_v22 = vmul.f32 %v822_v38, %v209_v52  ;;  %v343_v44 = vsel %vm333_vm6, nan, %v342_v11 }
  0xdb   :  { %v826_v54 = vpop.eup %825  ;;  %v639_v5 = vsel %vm1533_vm11, 0, %v637_v29  ;;  %v220_v2 = vmul.f32 %v824_v63, %v210_v61  ;;  %v549_v47 = vsel %vm539_vm1, nan, %v548_v43  ;;  %vm436_vm3 = vweird.f32 %v1623_v26  ;;  %v736_v43 = vld [vmem:[#allocation11 + $0x18] sm:$0xff] }
  0xdc   :  { %v828_v33 = vpop.eup %827  ;;  %v222_v27 = vmul.f32 %v826_v54, %v211_v51  ;;  %833 = vlog2.f32 %v218_v22  ;;  %v445_v32 = vsel %vm438_vm2, %v441_v19, %v444_v31  ;;  %v643_v25 = vand.u32 3, %v639_v5  ;;  %v740_v5 = vld [vmem:[#allocation11 + $0x20] sm:$0xff] }
  0xdd   :  { %v224_v13 = vmul.f32 %v828_v33, %v212_v1  ;;  %835 = vlog2.f32 %v220_v2  ;;  %v653_v18 = vsub.f32 1.0, %v343_v44  ;;  %v655_v17 = vsub.f32 1.0, %v549_v47 }
  0xde   :  { %837 = vlog2.f32 %v222_v27  ;;  %v446_v36 = vsel %vm436_vm3, nan, %v445_v32  ;;  %vm648_vm4 = vcmp.eq.s32.totalorder %v643_v25, 2  ;;  %vm645_vm5 = vcmp.eq.s32.totalorder %v643_v25, 0 }
  0xdf   :  { %839 = vlog2.f32 %v224_v13  ;;  %v689_v7 = vmul.f32 %v841_v45, %v653_v18  ;;  %v654_v9 = vsub.f32 1.0, %v446_v36  ;;  %v691_v3 = vmul.f32 %v842_v37, %v655_v17 }
  0xe0   :  { %vm644_vm6 = vcmp.lt.s32.totalorder %v643_v25, 2  ;;  %vm642_vm7 = vweird.f32 %v1624_v58 }
  0xe1   :  { %v693_v50 = vsel %vm661_vm0, %v689_v7, 0.0  ;;  %v690_v53 = vmul.f32 %v843_v30, %v654_v9  ;;  %v694_v15 = vsel %vm661_vm0, %v691_v3, 0.0 }
  0xe2   :  { %v830_v28 = vpop.eup %829  ;;  %v695_v58 = vadd.f32 %v694_v15, %v693_v50 }
  0xe3   :  { %v832_v46 = vpop.eup %831  ;;  %v649_v8 = vxor.u32 2147483648, %v830_v28  ;;  %v696_v35 = vsel %vm661_vm0, %v690_v53, 0.0 }
  0xe4   :  { %v646_v26 = vxor.u32 2147483648, %v832_v46  ;;  %v699_v61 = vsel %vm661_vm0, %v695_v58, 0.0 }
  0xe5   :  { %v650_v49 = vsel %vm648_vm4, %v649_v8, %v832_v46 }
  0xe6   :  { %v834_v16 = vpop.eup %833  ;;  %v647_v21 = vsel %vm645_vm5, %v830_v28, %v646_v26 }
  0xe7   :  { %v836_v42 = vpop.eup %835  ;;  %v651_v14 = vsel %vm644_vm6, %v647_v21, %v650_v49  ;;  %v226_v24 = vmul.f32 0.6931472, %v834_v16 }
  0xe8   :  { %v838_v34 = vpop.eup %837  ;;  %v652_v23 = vsel %vm642_vm7, nan, %v651_v14  ;;  %v228_v6 = vmul.f32 0.6931472, %v836_v42 }
  0xe9   :  { %v840_v20 = vpop.eup %839  ;;  %v656_v59 = vsub.f32 1.0, %v652_v23  ;;  %v230_v10 = vmul.f32 0.6931472, %v838_v34  ;;  %v233_v40 = vsub.f32 0.0, %v226_v24 }
  0xea   :  { %v232_v48 = vmul.f32 0.6931472, %v840_v20  ;;  %v234_v56 = vsub.f32 0.0, %v228_v6 }
  0xeb   :  { %v692_v57 = vmul.f32 %v844_v62, %v656_v59  ;;  %v235_v0 = vsub.f32 0.0, %v230_v10  ;;  %v702_v55 = vmul.f32 %v841_v45, %v233_v40 }
  0xec   :  { %v236_v60 = vsub.f32 0.0, %v232_v48  ;;  %v703_v4 = vmul.f32 %v843_v30, %v234_v56 }
  0xed   :  { %v697_v39 = vsel %vm661_vm0, %v692_v57, 0.0  ;;  %v704_v41 = vmul.f32 %v842_v37, %v235_v0  ;;  %v706_v52 = vsel %vm661_vm0, %v702_v55, 0.0 }
  0xee   :  { %v698_v12 = vadd.f32 %v697_v39, %v696_v35  ;;  %v705_v11 = vmul.f32 %v844_v62, %v236_v60  ;;  %v709_v29 = vsel %vm661_vm0, %v703_v4, 0.0 }
  0xef   :  { %v707_v51 = vsel %vm661_vm0, %v704_v41, 0.0 }
  0xf0   :  { %v700_v38 = vsel %vm661_vm0, %v698_v12, 0.0  ;;  %v708_v1 = vadd.f32 %v707_v51, %v706_v52  ;;  %v710_v63 = vsel %vm661_vm0, %v705_v11, 0.0 }
  0xf1   :  { %v701_v19 = vadd.f32 %v700_v38, %v699_v61  ;;  %v711_v31 = vadd.f32 %v710_v63, %v709_v29 }
  0xf2   :  { %v712_v22 = vsel %vm661_vm0, %v708_v1, 0.0 }
  0xf3   :  { %v737_v54 = vadd.f32 %v736_v43, %v701_v19  ;;  %v713_v44 = vsel %vm661_vm0, %v711_v31, 0.0 }
  0xf4   :  { %v714_v2 = vadd.f32 %v713_v44, %v712_v22 }
  0xf5   :  { %738 = vst.msk [vmem:[#allocation11 + $0x18] sm:$0xff] %vm661_vm0, %v737_v54 }
  0xf6   :  { %v741_v33 = vadd.f32 %v740_v5, %v714_v2 }
  0xf8   :  { %742 = vst.msk [vmem:[#allocation11 + $0x20] sm:$0xff] %vm661_vm0, %v741_v33 }
  0xf9   :  { %966 = shalt.err (!%p963_p2)
}
  0xfa   :  { %s967_s7 = scalar_lea.hbm %s1598_s5, 640 }
  0xfb   :  { %p968_p3 = scmp.ne.s32.totalorder %s1598_s5, %s967_s7  ;;  %p971_p4 = scmp.lt.u32.totalorder %s967_s7, %s1598_s5 }
  0xfd   :  { %p973_p5 = pnand %p971_p4, %p968_p3 }
  0xff   :  { %976 = shalt.err (!%p973_p5)
}
 0x100   :  { %754 = dma.vmem_to_hbm [thread:$0]  %s749_s28, 640, %s1598_s5, [#allocation4], %s987_s30, %s987_s30, %s988_s6  }
 0x101   :  { %983 = dma.done.wait [#allocation4], 640  }
 0x102   :  { %984 = vsyncadd [#allocation4], 4294966656 }
 0x103   :  { %758 = vsyncpa [#allocation3], 1 }
 0x104   :  { %759 = vsyncpa [#allocation6], 1 }
 0x105   :  { %760 = vsyncpa [#allocation9], 1 }
 0x106   :  { %761 = vsyncpa [#allocation4], 1 }

</bundles_post_ra>
